<compile_context>
chip_gen: v5e
topology: v5e:2x2
jax: 0.10.0
libtpu: 0.0.40
codegen_flags: <defaults>
</compile_context>

<pallas_src>
import functools
import math

import numpy as np
import jax
import jax.numpy as jnp
from jax import lax
from jax.experimental import pallas as pl
from jax.experimental.pallas import tpu as pltpu


def _fused_cnn_kernel(x_ref, mask_ref, *refs, shifts, n_layers, acts, nhw):
    """Whole ReLU_CNN forward, batch folded onto the lane axis.

    x_ref    : (cin_pad, N*H*W) f32   channels on sublanes, batch*pixels on lanes
    mask_ref : (K*K,     N*H*W) f32   1.0 where the tap stays inside its own image
    refs     : w_1, b_1, ..., w_L, b_L, o_ref
      w_l : (K*K, Cout_l, Cin_l) bf16   tap-major (dy*K + dx)
      b_l : (Cout_l, 1)          f32
      o   : (Cout_L, N*H*W)
    """
    o_ref = refs[-1]
    n_taps = len(shifts)

    x = x_ref[...].astype(jnp.float32)                          # (Cin, NHW)
    for l in range(n_layers):                                   # static unroll (3 layers)
        w_ref, b_ref = refs[2 * l], refs[2 * l + 1]
        cout = w_ref.shape[1]
        # Bias folded into the accumulator init (one broadcast per layer, hoisted).
        acc = jnp.broadcast_to(b_ref[...].astype(jnp.float32), (cout, nhw))
        # Tap-wise accumulation: <= 1 shifted tap + 1 accumulator live at a time.
        for t in range(n_taps):
            s = shifts[t]
            shifted = x if s == 0 else pltpu.roll(x, shift=(-s) % nhw, axis=1)  # XLU
            masked = shifted * mask_ref[pl.ds(t, 1), :]          # zero out-of-image taps (VPU, f32)
            acc = acc + jnp.dot(w_ref[t], masked.astype(jnp.bfloat16),
                                preferred_element_type=jnp.float32)  # MXU, bf16 operands
        act = acts[l]
        if act == "relu":
            acc = jnp.maximum(acc, 0.0)
        elif act == "sigmoid":
            # exp on EUP; approximate reciprocal also on EUP (free slot vs VPU divide).
            acc = pl.reciprocal(1.0 + jnp.exp(-acc), approx=True)
        elif act == "tanh":
            acc = jnp.tanh(acc)
        elif act != "none":
            raise ValueError(f"unknown activation {act}")
        x = acc
    o_ref[...] = x.astype(o_ref.dtype)


def prepare_relu_cnn_params(params):
    """Flatten/pre-cast conv params ONCE, outside the jitted forward.

    w (KH,KW,Cin,Cout) HWIO -> (KH*KW, Cout, cin_pad) bf16, tap index = dy*KW + dx
    b (Cout,)               -> (Cout, 1) f32
    First layer's Cin is zero-padded to a sublane multiple (8); the wrapper pads the
    input channels to match (zero weights x zero inputs -> no effect on the result).
    """
    flat = []
    for i, (w, b) in enumerate(params):
        KH, KW, Cin, Cout = w.shape
        cin_pad = max(8, -(-Cin // 8) * 8) if i == 0 else Cin
        if cin_pad > Cin:
            w = jnp.pad(w, ((0, 0), (0, 0), (0, cin_pad - Cin), (0, 0)))
        w_flat = jnp.transpose(w, (0, 1, 3, 2)).reshape(KH * KW, Cout, cin_pad)
        flat.append(w_flat.astype(jnp.bfloat16))
        flat.append(b.reshape(-1, 1).astype(jnp.float32))
    return flat


def relu_cnn_forward(x_nchw, flat_params, output="sigmoid"):
    """Forward pass matching ReLU_CNN.forward. Input/output are NCHW (torch)."""
    N, C0, H, W = x_nchw.shape
    HW = H * W
    NHW = N * HW
    n_layers = len(flat_params) // 2
    KK = flat_params[0].shape[0]
    K = int(round(math.sqrt(KK)))
    c_pad = flat_params[0].shape[2]
    cout_last = flat_params[-2].shape[1]
    acts = tuple("relu" if i < n_layers - 1 else output for i in range(n_layers))

    # Channels on sublanes, batch*pixels on lanes -> single grid step, lane-dense I/O.
    x = x_nchw.reshape(N, C0, HW)
    if c_pad > C0:
        x = jnp.pad(x, ((0, 0), (0, c_pad - C0), (0, 0)))
    x = jnp.transpose(x, (1, 0, 2)).reshape(c_pad, NHW)

    # Per-tap lane shifts + per-image validity masks, built at trace time with numpy
    # (become compile-time constants).  hh/ww are derived from p % HW so dy/dx taps
    # never leak across the seam between batch elements on the folded lane axis.
    ph = pw = (K - 1) // 2
    p = np.arange(NHW)
    hh = (p % HW) // W
    ww = (p % HW) % W
    shifts, masks = [], []
    for dy in range(K):
        for dx in range(K):
            oy, ox = dy - ph, dx - pw
            shifts.append(oy * W + ox)
            masks.append((hh + oy >= 0) & (hh + oy < H)
                         & (ww + ox >= 0) & (ww + ox < W))
    mask_arr = jnp.asarray(np.stack(masks).astype(np.float32))   # (K*K, NHW)

    in_specs = [pl.BlockSpec((c_pad, NHW), lambda i: (0, 0)),
                pl.BlockSpec((KK, NHW), lambda i: (0, 0))]
    for arr in flat_params:  # weights/biases: tiny full blocks
        if arr.ndim == 3:
            in_specs.append(pl.BlockSpec(arr.shape, lambda i: (0, 0, 0)))
        else:
            in_specs.append(pl.BlockSpec(arr.shape, lambda i: (0, 0)))

    flops = 0
    for l in range(n_layers):
        kk_l, cout_l, cin_l = flat_params[2 * l].shape
        flops += 2 * kk_l * cin_l * cout_l * NHW
    transcendentals = NHW * cout_last if output in ("sigmoid", "tanh") else 0
    bytes_accessed = int(x.size * 4 + mask_arr.size * 4 + cout_last * NHW * 4
                         + sum(int(np.prod(a.shape)) * a.dtype.itemsize
                               for a in flat_params))

    kernel = functools.partial(_fused_cnn_kernel, shifts=tuple(shifts),
                               n_layers=n_layers, acts=acts, nhw=NHW)
    out = pl.pallas_call(
        kernel,
        out_shape=jax.ShapeDtypeStruct((cout_last, NHW), x_nchw.dtype),
        grid_spec=pltpu.PrefetchScalarGridSpec(
            num_scalar_prefetch=0,
            grid=(1,),
            in_specs=in_specs,
            out_specs=pl.BlockSpec((cout_last, NHW), lambda i: (0, 0)),
        ),
        compiler_params=pltpu.CompilerParams(
            dimension_semantics=("arbitrary",)),
        cost_estimate=pl.CostEstimate(flops=int(flops),
                                      transcendentals=int(transcendentals),
                                      bytes_accessed=bytes_accessed),
    )(x, mask_arr, *flat_params)

    return jnp.transpose(out.reshape(cout_last, N, HW), (1, 0, 2)).reshape(
        N, cout_last, H, W)


def init_relu_cnn_params(key, channels, filter_size):
    """Deterministic params mimicking PyTorch Conv2d default init (uniform +/-1/sqrt(fan_in))."""
    params = []
    for i in range(len(channels) - 1):
        cin, cout = channels[i], channels[i + 1]
        key, kw, kb = jax.random.split(key, 3)
        fan_in = cin * filter_size * filter_size
        bound = 1.0 / math.sqrt(fan_in)
        w = jax.random.uniform(kw, (filter_size, filter_size, cin, cout),
                               jnp.float32, minval=-bound, maxval=bound)  # HWIO
        b = jax.random.uniform(kb, (cout,), jnp.float32,
                               minval=-bound, maxval=bound)
        params.append((w, b))
    return params


def relu_cnn_reference(x_nchw, params, output="sigmoid"):
    """Pure-JAX reference (lax.conv) for numerical validation."""
    x = x_nchw
    n = len(params)
    for i, (w, b) in enumerate(params):
        w_oihw = jnp.transpose(w, (3, 2, 0, 1))
        x = lax.conv_general_dilated(
            x, w_oihw, window_strides=(1, 1), padding="SAME",
            dimension_numbers=("NCHW", "OIHW", "NCHW"))
        x = x + b.reshape(1, -1, 1, 1)
        act = output if i == n - 1 else "relu"
        if act == "relu":
            x = jnp.maximum(x, 0.0)
        elif act == "sigmoid":
            x = jax.nn.sigmoid(x)
        elif act == "tanh":
            x = jnp.tanh(x)
    return x


if __name__ == "__main__":
    # Module config: imdims=(16,16), channels=[4,8,8,2], filter_size=3, output='sigmoid'
    channels = [4, 8, 8, 2]
    filter_size = 3

    key = jax.random.PRNGKey(0)
    k_params, k_x = jax.random.split(key)
    params = init_relu_cnn_params(k_params, channels, filter_size)
    flat_params = prepare_relu_cnn_params(params)   # flatten/pad/bf16-cast ONCE, outside jit

    x = jax.random.normal(k_x, (2, channels[0], 16, 16), jnp.float32)  # NCHW

    fwd = jax.jit(functools.partial(relu_cnn_forward, output="sigmoid"))
    y = jax.block_until_ready(fwd(x, flat_params))

    assert y.shape == (2, channels[-1], 16, 16), y.shape
    assert bool(jnp.all(jnp.isfinite(y)))
    assert bool(jnp.all((y >= 0.0) & (y <= 1.0)))  # sigmoid output range

    y_ref = relu_cnn_reference(x, params, output="sigmoid")
    max_err = float(jnp.max(jnp.abs(y - y_ref)))
    assert jnp.allclose(y, y_ref, atol=2e-2, rtol=0.0), max_err

    print("KERNEL_OK")
</pallas_src>

<mosaic_0001>
module attributes {stable_mosaic.version = 11 : i64} {
  func.func @_fused_cnn_kernel(%arg0: i32, %arg1: memref<8x512xf32, #tpu.memory_space<vmem>>, %arg2: memref<9x512xf32, #tpu.memory_space<vmem>>, %arg3: memref<9x8x8xbf16, #tpu.memory_space<vmem>>, %arg4: memref<8x1xf32, #tpu.memory_space<vmem>>, %arg5: memref<9x8x8xbf16, #tpu.memory_space<vmem>>, %arg6: memref<8x1xf32, #tpu.memory_space<vmem>>, %arg7: memref<9x2x8xbf16, #tpu.memory_space<vmem>>, %arg8: memref<2x1xf32, #tpu.memory_space<vmem>>, %arg9: memref<2x512xf32, #tpu.memory_space<vmem>>) attributes {dimension_semantics = [#tpu.dimension_semantics<arbitrary>], iteration_bounds = array<i64: 1>, scalar_prefetch = 0 : i64, scratch_operands = 0 : i64, tpu.core_type = #tpu.core_type<tc>, window_params = [{pipeline_mode = #tpu.pipeline_mode<synchronous>, transform_indices = @transform_0, window_bounds = array<i64: 8, 512>}, {pipeline_mode = #tpu.pipeline_mode<synchronous>, transform_indices = @transform_1, window_bounds = array<i64: 9, 512>}, {pipeline_mode = #tpu.pipeline_mode<synchronous>, transform_indices = @transform_2, window_bounds = array<i64: 9, 8, 8>}, {pipeline_mode = #tpu.pipeline_mode<synchronous>, transform_indices = @transform_3, window_bounds = array<i64: 8, 1>}, {pipeline_mode = #tpu.pipeline_mode<synchronous>, transform_indices = @transform_4, window_bounds = array<i64: 9, 8, 8>}, {pipeline_mode = #tpu.pipeline_mode<synchronous>, transform_indices = @transform_5, window_bounds = array<i64: 8, 1>}, {pipeline_mode = #tpu.pipeline_mode<synchronous>, transform_indices = @transform_6, window_bounds = array<i64: 9, 2, 8>}, {pipeline_mode = #tpu.pipeline_mode<synchronous>, transform_indices = @transform_7, window_bounds = array<i64: 2, 1>}, {pipeline_mode = #tpu.pipeline_mode<synchronous>, transform_indices = @transform_8, window_bounds = array<i64: 2, 512>}]} {
    %c0 = arith.constant 0 : index
    %c0_0 = arith.constant 0 : index
    %0 = vector.load %arg1[%c0, %c0_0] : memref<8x512xf32, #tpu.memory_space<vmem>>, vector<8x512xf32>
    %c0_1 = arith.constant 0 : index
    %c0_2 = arith.constant 0 : index
    %1 = vector.load %arg4[%c0_1, %c0_2] : memref<8x1xf32, #tpu.memory_space<vmem>>, vector<8x1xf32>
    %2 = vector.shape_cast %1 : vector<8x1xf32> to vector<8x1xf32>
    %3 = vector.broadcast %2 : vector<8x1xf32> to vector<8x512xf32>
    %c17_i32 = arith.constant 17 : i32
    %4 = tpu.dynamic_rotate %0 by %c17_i32 dim 1 : vector<8x512xf32>, i32 -> vector<8x512xf32>
    %c0_3 = arith.constant 0 : index
    %c0_4 = arith.constant 0 : index
    %5 = vector.load %arg2[%c0_3, %c0_4] : memref<9x512xf32, #tpu.memory_space<vmem>>, vector<1x512xf32>
    %6 = vector.broadcast %5 : vector<1x512xf32> to vector<8x512xf32>
    %7 = arith.mulf %4, %6 : vector<8x512xf32>
    %c0_5 = arith.constant 0 : index
    %c0_6 = arith.constant 0 : index
    %c0_7 = arith.constant 0 : index
    %8 = vector.load %arg3[%c0_5, %c0_6, %c0_7] : memref<9x8x8xbf16, #tpu.memory_space<vmem>>, vector<1x8x8xbf16>
    %9 = vector.shape_cast %8 : vector<1x8x8xbf16> to vector<8x8xbf16>
    %10 = arith.truncf %7 : vector<8x512xf32> to vector<8x512xbf16>
    %cst = arith.constant dense<0.000000e+00> : vector<8x512xf32>
    %11 = tpu.matmul %9, %10, %cst {dimension_numbers = #tpu.dot_dimension_numbers<[1], [0], [0], [1], [0, 0, 1, 1], [], []>} : vector<8x8xbf16>, vector<8x512xbf16>, vector<8x512xf32> -> vector<8x512xf32>
    %12 = arith.addf %3, %11 : vector<8x512xf32>
    %c16_i32 = arith.constant 16 : i32
    %13 = tpu.dynamic_rotate %0 by %c16_i32 dim 1 : vector<8x512xf32>, i32 -> vector<8x512xf32>
    %c1 = arith.constant 1 : index
    %c0_8 = arith.constant 0 : index
    %14 = vector.load %arg2[%c1, %c0_8] : memref<9x512xf32, #tpu.memory_space<vmem>>, vector<1x512xf32>
    %15 = vector.broadcast %14 : vector<1x512xf32> to vector<8x512xf32>
    %16 = arith.mulf %13, %15 : vector<8x512xf32>
    %c1_9 = arith.constant 1 : index
    %c0_10 = arith.constant 0 : index
    %c0_11 = arith.constant 0 : index
    %17 = vector.load %arg3[%c1_9, %c0_10, %c0_11] : memref<9x8x8xbf16, #tpu.memory_space<vmem>>, vector<1x8x8xbf16>
    %18 = vector.shape_cast %17 : vector<1x8x8xbf16> to vector<8x8xbf16>
    %19 = arith.truncf %16 : vector<8x512xf32> to vector<8x512xbf16>
    %cst_12 = arith.constant dense<0.000000e+00> : vector<8x512xf32>
    %20 = tpu.matmul %18, %19, %cst_12 {dimension_numbers = #tpu.dot_dimension_numbers<[1], [0], [0], [1], [0, 0, 1, 1], [], []>} : vector<8x8xbf16>, vector<8x512xbf16>, vector<8x512xf32> -> vector<8x512xf32>
    %21 = arith.addf %12, %20 : vector<8x512xf32>
    %c15_i32 = arith.constant 15 : i32
    %22 = tpu.dynamic_rotate %0 by %c15_i32 dim 1 : vector<8x512xf32>, i32 -> vector<8x512xf32>
    %c2 = arith.constant 2 : index
    %c0_13 = arith.constant 0 : index
    %23 = vector.load %arg2[%c2, %c0_13] : memref<9x512xf32, #tpu.memory_space<vmem>>, vector<1x512xf32>
    %24 = vector.broadcast %23 : vector<1x512xf32> to vector<8x512xf32>
    %25 = arith.mulf %22, %24 : vector<8x512xf32>
    %c2_14 = arith.constant 2 : index
    %c0_15 = arith.constant 0 : index
    %c0_16 = arith.constant 0 : index
    %26 = vector.load %arg3[%c2_14, %c0_15, %c0_16] : memref<9x8x8xbf16, #tpu.memory_space<vmem>>, vector<1x8x8xbf16>
    %27 = vector.shape_cast %26 : vector<1x8x8xbf16> to vector<8x8xbf16>
    %28 = arith.truncf %25 : vector<8x512xf32> to vector<8x512xbf16>
    %cst_17 = arith.constant dense<0.000000e+00> : vector<8x512xf32>
    %29 = tpu.matmul %27, %28, %cst_17 {dimension_numbers = #tpu.dot_dimension_numbers<[1], [0], [0], [1], [0, 0, 1, 1], [], []>} : vector<8x8xbf16>, vector<8x512xbf16>, vector<8x512xf32> -> vector<8x512xf32>
    %30 = arith.addf %21, %29 : vector<8x512xf32>
    %c1_i32 = arith.constant 1 : i32
    %31 = tpu.dynamic_rotate %0 by %c1_i32 dim 1 : vector<8x512xf32>, i32 -> vector<8x512xf32>
    %c3 = arith.constant 3 : index
    %c0_18 = arith.constant 0 : index
    %32 = vector.load %arg2[%c3, %c0_18] : memref<9x512xf32, #tpu.memory_space<vmem>>, vector<1x512xf32>
    %33 = vector.broadcast %32 : vector<1x512xf32> to vector<8x512xf32>
    %34 = arith.mulf %31, %33 : vector<8x512xf32>
    %c3_19 = arith.constant 3 : index
    %c0_20 = arith.constant 0 : index
    %c0_21 = arith.constant 0 : index
    %35 = vector.load %arg3[%c3_19, %c0_20, %c0_21] : memref<9x8x8xbf16, #tpu.memory_space<vmem>>, vector<1x8x8xbf16>
    %36 = vector.shape_cast %35 : vector<1x8x8xbf16> to vector<8x8xbf16>
    %37 = arith.truncf %34 : vector<8x512xf32> to vector<8x512xbf16>
    %cst_22 = arith.constant dense<0.000000e+00> : vector<8x512xf32>
    %38 = tpu.matmul %36, %37, %cst_22 {dimension_numbers = #tpu.dot_dimension_numbers<[1], [0], [0], [1], [0, 0, 1, 1], [], []>} : vector<8x8xbf16>, vector<8x512xbf16>, vector<8x512xf32> -> vector<8x512xf32>
    %39 = arith.addf %30, %38 : vector<8x512xf32>
    %c4 = arith.constant 4 : index
    %c0_23 = arith.constant 0 : index
    %40 = vector.load %arg2[%c4, %c0_23] : memref<9x512xf32, #tpu.memory_space<vmem>>, vector<1x512xf32>
    %41 = vector.broadcast %40 : vector<1x512xf32> to vector<8x512xf32>
    %42 = arith.mulf %0, %41 : vector<8x512xf32>
    %c4_24 = arith.constant 4 : index
    %c0_25 = arith.constant 0 : index
    %c0_26 = arith.constant 0 : index
    %43 = vector.load %arg3[%c4_24, %c0_25, %c0_26] : memref<9x8x8xbf16, #tpu.memory_space<vmem>>, vector<1x8x8xbf16>
    %44 = vector.shape_cast %43 : vector<1x8x8xbf16> to vector<8x8xbf16>
    %45 = arith.truncf %42 : vector<8x512xf32> to vector<8x512xbf16>
    %cst_27 = arith.constant dense<0.000000e+00> : vector<8x512xf32>
    %46 = tpu.matmul %44, %45, %cst_27 {dimension_numbers = #tpu.dot_dimension_numbers<[1], [0], [0], [1], [0, 0, 1, 1], [], []>} : vector<8x8xbf16>, vector<8x512xbf16>, vector<8x512xf32> -> vector<8x512xf32>
    %47 = arith.addf %39, %46 : vector<8x512xf32>
    %c511_i32 = arith.constant 511 : i32
    %48 = tpu.dynamic_rotate %0 by %c511_i32 dim 1 : vector<8x512xf32>, i32 -> vector<8x512xf32>
    %c5 = arith.constant 5 : index
    %c0_28 = arith.constant 0 : index
    %49 = vector.load %arg2[%c5, %c0_28] : memref<9x512xf32, #tpu.memory_space<vmem>>, vector<1x512xf32>
    %50 = vector.broadcast %49 : vector<1x512xf32> to vector<8x512xf32>
    %51 = arith.mulf %48, %50 : vector<8x512xf32>
    %c5_29 = arith.constant 5 : index
    %c0_30 = arith.constant 0 : index
    %c0_31 = arith.constant 0 : index
    %52 = vector.load %arg3[%c5_29, %c0_30, %c0_31] : memref<9x8x8xbf16, #tpu.memory_space<vmem>>, vector<1x8x8xbf16>
    %53 = vector.shape_cast %52 : vector<1x8x8xbf16> to vector<8x8xbf16>
    %54 = arith.truncf %51 : vector<8x512xf32> to vector<8x512xbf16>
    %cst_32 = arith.constant dense<0.000000e+00> : vector<8x512xf32>
    %55 = tpu.matmul %53, %54, %cst_32 {dimension_numbers = #tpu.dot_dimension_numbers<[1], [0], [0], [1], [0, 0, 1, 1], [], []>} : vector<8x8xbf16>, vector<8x512xbf16>, vector<8x512xf32> -> vector<8x512xf32>
    %56 = arith.addf %47, %55 : vector<8x512xf32>
    %c497_i32 = arith.constant 497 : i32
    %57 = tpu.dynamic_rotate %0 by %c497_i32 dim 1 : vector<8x512xf32>, i32 -> vector<8x512xf32>
    %c6 = arith.constant 6 : index
    %c0_33 = arith.constant 0 : index
    %58 = vector.load %arg2[%c6, %c0_33] : memref<9x512xf32, #tpu.memory_space<vmem>>, vector<1x512xf32>
    %59 = vector.broadcast %58 : vector<1x512xf32> to vector<8x512xf32>
    %60 = arith.mulf %57, %59 : vector<8x512xf32>
    %c6_34 = arith.constant 6 : index
    %c0_35 = arith.constant 0 : index
    %c0_36 = arith.constant 0 : index
    %61 = vector.load %arg3[%c6_34, %c0_35, %c0_36] : memref<9x8x8xbf16, #tpu.memory_space<vmem>>, vector<1x8x8xbf16>
    %62 = vector.shape_cast %61 : vector<1x8x8xbf16> to vector<8x8xbf16>
    %63 = arith.truncf %60 : vector<8x512xf32> to vector<8x512xbf16>
    %cst_37 = arith.constant dense<0.000000e+00> : vector<8x512xf32>
    %64 = tpu.matmul %62, %63, %cst_37 {dimension_numbers = #tpu.dot_dimension_numbers<[1], [0], [0], [1], [0, 0, 1, 1], [], []>} : vector<8x8xbf16>, vector<8x512xbf16>, vector<8x512xf32> -> vector<8x512xf32>
    %65 = arith.addf %56, %64 : vector<8x512xf32>
    %c496_i32 = arith.constant 496 : i32
    %66 = tpu.dynamic_rotate %0 by %c496_i32 dim 1 : vector<8x512xf32>, i32 -> vector<8x512xf32>
    %c7 = arith.constant 7 : index
    %c0_38 = arith.constant 0 : index
    %67 = vector.load %arg2[%c7, %c0_38] : memref<9x512xf32, #tpu.memory_space<vmem>>, vector<1x512xf32>
    %68 = vector.broadcast %67 : vector<1x512xf32> to vector<8x512xf32>
    %69 = arith.mulf %66, %68 : vector<8x512xf32>
    %c7_39 = arith.constant 7 : index
    %c0_40 = arith.constant 0 : index
    %c0_41 = arith.constant 0 : index
    %70 = vector.load %arg3[%c7_39, %c0_40, %c0_41] : memref<9x8x8xbf16, #tpu.memory_space<vmem>>, vector<1x8x8xbf16>
    %71 = vector.shape_cast %70 : vector<1x8x8xbf16> to vector<8x8xbf16>
    %72 = arith.truncf %69 : vector<8x512xf32> to vector<8x512xbf16>
    %cst_42 = arith.constant dense<0.000000e+00> : vector<8x512xf32>
    %73 = tpu.matmul %71, %72, %cst_42 {dimension_numbers = #tpu.dot_dimension_numbers<[1], [0], [0], [1], [0, 0, 1, 1], [], []>} : vector<8x8xbf16>, vector<8x512xbf16>, vector<8x512xf32> -> vector<8x512xf32>
    %74 = arith.addf %65, %73 : vector<8x512xf32>
    %c495_i32 = arith.constant 495 : i32
    %75 = tpu.dynamic_rotate %0 by %c495_i32 dim 1 : vector<8x512xf32>, i32 -> vector<8x512xf32>
    %c8 = arith.constant 8 : index
    %c0_43 = arith.constant 0 : index
    %76 = vector.load %arg2[%c8, %c0_43] : memref<9x512xf32, #tpu.memory_space<vmem>>, vector<1x512xf32>
    %77 = vector.broadcast %76 : vector<1x512xf32> to vector<8x512xf32>
    %78 = arith.mulf %75, %77 : vector<8x512xf32>
    %c8_44 = arith.constant 8 : index
    %c0_45 = arith.constant 0 : index
    %c0_46 = arith.constant 0 : index
    %79 = vector.load %arg3[%c8_44, %c0_45, %c0_46] : memref<9x8x8xbf16, #tpu.memory_space<vmem>>, vector<1x8x8xbf16>
    %80 = vector.shape_cast %79 : vector<1x8x8xbf16> to vector<8x8xbf16>
    %81 = arith.truncf %78 : vector<8x512xf32> to vector<8x512xbf16>
    %cst_47 = arith.constant dense<0.000000e+00> : vector<8x512xf32>
    %82 = tpu.matmul %80, %81, %cst_47 {dimension_numbers = #tpu.dot_dimension_numbers<[1], [0], [0], [1], [0, 0, 1, 1], [], []>} : vector<8x8xbf16>, vector<8x512xbf16>, vector<8x512xf32> -> vector<8x512xf32>
    %83 = arith.addf %74, %82 : vector<8x512xf32>
    %cst_48 = arith.constant 0.000000e+00 : f32
    %84 = vector.broadcast %cst_48 : f32 to vector<8x512xf32>
    %85 = arith.maximumf %83, %84 : vector<8x512xf32>
    %c0_49 = arith.constant 0 : index
    %c0_50 = arith.constant 0 : index
    %86 = vector.load %arg6[%c0_49, %c0_50] : memref<8x1xf32, #tpu.memory_space<vmem>>, vector<8x1xf32>
    %87 = vector.shape_cast %86 : vector<8x1xf32> to vector<8x1xf32>
    %88 = vector.broadcast %87 : vector<8x1xf32> to vector<8x512xf32>
    %c17_i32_51 = arith.constant 17 : i32
    %89 = tpu.dynamic_rotate %85 by %c17_i32_51 dim 1 : vector<8x512xf32>, i32 -> vector<8x512xf32>
    %c0_52 = arith.constant 0 : index
    %c0_53 = arith.constant 0 : index
    %90 = vector.load %arg2[%c0_52, %c0_53] : memref<9x512xf32, #tpu.memory_space<vmem>>, vector<1x512xf32>
    %91 = vector.broadcast %90 : vector<1x512xf32> to vector<8x512xf32>
    %92 = arith.mulf %89, %91 : vector<8x512xf32>
    %c0_54 = arith.constant 0 : index
    %c0_55 = arith.constant 0 : index
    %c0_56 = arith.constant 0 : index
    %93 = vector.load %arg5[%c0_54, %c0_55, %c0_56] : memref<9x8x8xbf16, #tpu.memory_space<vmem>>, vector<1x8x8xbf16>
    %94 = vector.shape_cast %93 : vector<1x8x8xbf16> to vector<8x8xbf16>
    %95 = arith.truncf %92 : vector<8x512xf32> to vector<8x512xbf16>
    %cst_57 = arith.constant dense<0.000000e+00> : vector<8x512xf32>
    %96 = tpu.matmul %94, %95, %cst_57 {dimension_numbers = #tpu.dot_dimension_numbers<[1], [0], [0], [1], [0, 0, 1, 1], [], []>} : vector<8x8xbf16>, vector<8x512xbf16>, vector<8x512xf32> -> vector<8x512xf32>
    %97 = arith.addf %88, %96 : vector<8x512xf32>
    %c16_i32_58 = arith.constant 16 : i32
    %98 = tpu.dynamic_rotate %85 by %c16_i32_58 dim 1 : vector<8x512xf32>, i32 -> vector<8x512xf32>
    %c1_59 = arith.constant 1 : index
    %c0_60 = arith.constant 0 : index
    %99 = vector.load %arg2[%c1_59, %c0_60] : memref<9x512xf32, #tpu.memory_space<vmem>>, vector<1x512xf32>
    %100 = vector.broadcast %99 : vector<1x512xf32> to vector<8x512xf32>
    %101 = arith.mulf %98, %100 : vector<8x512xf32>
    %c1_61 = arith.constant 1 : index
    %c0_62 = arith.constant 0 : index
    %c0_63 = arith.constant 0 : index
    %102 = vector.load %arg5[%c1_61, %c0_62, %c0_63] : memref<9x8x8xbf16, #tpu.memory_space<vmem>>, vector<1x8x8xbf16>
    %103 = vector.shape_cast %102 : vector<1x8x8xbf16> to vector<8x8xbf16>
    %104 = arith.truncf %101 : vector<8x512xf32> to vector<8x512xbf16>
    %cst_64 = arith.constant dense<0.000000e+00> : vector<8x512xf32>
    %105 = tpu.matmul %103, %104, %cst_64 {dimension_numbers = #tpu.dot_dimension_numbers<[1], [0], [0], [1], [0, 0, 1, 1], [], []>} : vector<8x8xbf16>, vector<8x512xbf16>, vector<8x512xf32> -> vector<8x512xf32>
    %106 = arith.addf %97, %105 : vector<8x512xf32>
    %c15_i32_65 = arith.constant 15 : i32
    %107 = tpu.dynamic_rotate %85 by %c15_i32_65 dim 1 : vector<8x512xf32>, i32 -> vector<8x512xf32>
    %c2_66 = arith.constant 2 : index
    %c0_67 = arith.constant 0 : index
    %108 = vector.load %arg2[%c2_66, %c0_67] : memref<9x512xf32, #tpu.memory_space<vmem>>, vector<1x512xf32>
    %109 = vector.broadcast %108 : vector<1x512xf32> to vector<8x512xf32>
    %110 = arith.mulf %107, %109 : vector<8x512xf32>
    %c2_68 = arith.constant 2 : index
    %c0_69 = arith.constant 0 : index
    %c0_70 = arith.constant 0 : index
    %111 = vector.load %arg5[%c2_68, %c0_69, %c0_70] : memref<9x8x8xbf16, #tpu.memory_space<vmem>>, vector<1x8x8xbf16>
    %112 = vector.shape_cast %111 : vector<1x8x8xbf16> to vector<8x8xbf16>
    %113 = arith.truncf %110 : vector<8x512xf32> to vector<8x512xbf16>
    %cst_71 = arith.constant dense<0.000000e+00> : vector<8x512xf32>
    %114 = tpu.matmul %112, %113, %cst_71 {dimension_numbers = #tpu.dot_dimension_numbers<[1], [0], [0], [1], [0, 0, 1, 1], [], []>} : vector<8x8xbf16>, vector<8x512xbf16>, vector<8x512xf32> -> vector<8x512xf32>
    %115 = arith.addf %106, %114 : vector<8x512xf32>
    %c1_i32_72 = arith.constant 1 : i32
    %116 = tpu.dynamic_rotate %85 by %c1_i32_72 dim 1 : vector<8x512xf32>, i32 -> vector<8x512xf32>
    %c3_73 = arith.constant 3 : index
    %c0_74 = arith.constant 0 : index
    %117 = vector.load %arg2[%c3_73, %c0_74] : memref<9x512xf32, #tpu.memory_space<vmem>>, vector<1x512xf32>
    %118 = vector.broadcast %117 : vector<1x512xf32> to vector<8x512xf32>
    %119 = arith.mulf %116, %118 : vector<8x512xf32>
    %c3_75 = arith.constant 3 : index
    %c0_76 = arith.constant 0 : index
    %c0_77 = arith.constant 0 : index
    %120 = vector.load %arg5[%c3_75, %c0_76, %c0_77] : memref<9x8x8xbf16, #tpu.memory_space<vmem>>, vector<1x8x8xbf16>
    %121 = vector.shape_cast %120 : vector<1x8x8xbf16> to vector<8x8xbf16>
    %122 = arith.truncf %119 : vector<8x512xf32> to vector<8x512xbf16>
    %cst_78 = arith.constant dense<0.000000e+00> : vector<8x512xf32>
    %123 = tpu.matmul %121, %122, %cst_78 {dimension_numbers = #tpu.dot_dimension_numbers<[1], [0], [0], [1], [0, 0, 1, 1], [], []>} : vector<8x8xbf16>, vector<8x512xbf16>, vector<8x512xf32> -> vector<8x512xf32>
    %124 = arith.addf %115, %123 : vector<8x512xf32>
    %c4_79 = arith.constant 4 : index
    %c0_80 = arith.constant 0 : index
    %125 = vector.load %arg2[%c4_79, %c0_80] : memref<9x512xf32, #tpu.memory_space<vmem>>, vector<1x512xf32>
    %126 = vector.broadcast %125 : vector<1x512xf32> to vector<8x512xf32>
    %127 = arith.mulf %85, %126 : vector<8x512xf32>
    %c4_81 = arith.constant 4 : index
    %c0_82 = arith.constant 0 : index
    %c0_83 = arith.constant 0 : index
    %128 = vector.load %arg5[%c4_81, %c0_82, %c0_83] : memref<9x8x8xbf16, #tpu.memory_space<vmem>>, vector<1x8x8xbf16>
    %129 = vector.shape_cast %128 : vector<1x8x8xbf16> to vector<8x8xbf16>
    %130 = arith.truncf %127 : vector<8x512xf32> to vector<8x512xbf16>
    %cst_84 = arith.constant dense<0.000000e+00> : vector<8x512xf32>
    %131 = tpu.matmul %129, %130, %cst_84 {dimension_numbers = #tpu.dot_dimension_numbers<[1], [0], [0], [1], [0, 0, 1, 1], [], []>} : vector<8x8xbf16>, vector<8x512xbf16>, vector<8x512xf32> -> vector<8x512xf32>
    %132 = arith.addf %124, %131 : vector<8x512xf32>
    %c511_i32_85 = arith.constant 511 : i32
    %133 = tpu.dynamic_rotate %85 by %c511_i32_85 dim 1 : vector<8x512xf32>, i32 -> vector<8x512xf32>
    %c5_86 = arith.constant 5 : index
    %c0_87 = arith.constant 0 : index
    %134 = vector.load %arg2[%c5_86, %c0_87] : memref<9x512xf32, #tpu.memory_space<vmem>>, vector<1x512xf32>
    %135 = vector.broadcast %134 : vector<1x512xf32> to vector<8x512xf32>
    %136 = arith.mulf %133, %135 : vector<8x512xf32>
    %c5_88 = arith.constant 5 : index
    %c0_89 = arith.constant 0 : index
    %c0_90 = arith.constant 0 : index
    %137 = vector.load %arg5[%c5_88, %c0_89, %c0_90] : memref<9x8x8xbf16, #tpu.memory_space<vmem>>, vector<1x8x8xbf16>
    %138 = vector.shape_cast %137 : vector<1x8x8xbf16> to vector<8x8xbf16>
    %139 = arith.truncf %136 : vector<8x512xf32> to vector<8x512xbf16>
    %cst_91 = arith.constant dense<0.000000e+00> : vector<8x512xf32>
    %140 = tpu.matmul %138, %139, %cst_91 {dimension_numbers = #tpu.dot_dimension_numbers<[1], [0], [0], [1], [0, 0, 1, 1], [], []>} : vector<8x8xbf16>, vector<8x512xbf16>, vector<8x512xf32> -> vector<8x512xf32>
    %141 = arith.addf %132, %140 : vector<8x512xf32>
    %c497_i32_92 = arith.constant 497 : i32
    %142 = tpu.dynamic_rotate %85 by %c497_i32_92 dim 1 : vector<8x512xf32>, i32 -> vector<8x512xf32>
    %c6_93 = arith.constant 6 : index
    %c0_94 = arith.constant 0 : index
    %143 = vector.load %arg2[%c6_93, %c0_94] : memref<9x512xf32, #tpu.memory_space<vmem>>, vector<1x512xf32>
    %144 = vector.broadcast %143 : vector<1x512xf32> to vector<8x512xf32>
    %145 = arith.mulf %142, %144 : vector<8x512xf32>
    %c6_95 = arith.constant 6 : index
    %c0_96 = arith.constant 0 : index
    %c0_97 = arith.constant 0 : index
    %146 = vector.load %arg5[%c6_95, %c0_96, %c0_97] : memref<9x8x8xbf16, #tpu.memory_space<vmem>>, vector<1x8x8xbf16>
    %147 = vector.shape_cast %146 : vector<1x8x8xbf16> to vector<8x8xbf16>
    %148 = arith.truncf %145 : vector<8x512xf32> to vector<8x512xbf16>
    %cst_98 = arith.constant dense<0.000000e+00> : vector<8x512xf32>
    %149 = tpu.matmul %147, %148, %cst_98 {dimension_numbers = #tpu.dot_dimension_numbers<[1], [0], [0], [1], [0, 0, 1, 1], [], []>} : vector<8x8xbf16>, vector<8x512xbf16>, vector<8x512xf32> -> vector<8x512xf32>
    %150 = arith.addf %141, %149 : vector<8x512xf32>
    %c496_i32_99 = arith.constant 496 : i32
    %151 = tpu.dynamic_rotate %85 by %c496_i32_99 dim 1 : vector<8x512xf32>, i32 -> vector<8x512xf32>
    %c7_100 = arith.constant 7 : index
    %c0_101 = arith.constant 0 : index
    %152 = vector.load %arg2[%c7_100, %c0_101] : memref<9x512xf32, #tpu.memory_space<vmem>>, vector<1x512xf32>
    %153 = vector.broadcast %152 : vector<1x512xf32> to vector<8x512xf32>
    %154 = arith.mulf %151, %153 : vector<8x512xf32>
    %c7_102 = arith.constant 7 : index
    %c0_103 = arith.constant 0 : index
    %c0_104 = arith.constant 0 : index
    %155 = vector.load %arg5[%c7_102, %c0_103, %c0_104] : memref<9x8x8xbf16, #tpu.memory_space<vmem>>, vector<1x8x8xbf16>
    %156 = vector.shape_cast %155 : vector<1x8x8xbf16> to vector<8x8xbf16>
    %157 = arith.truncf %154 : vector<8x512xf32> to vector<8x512xbf16>
    %cst_105 = arith.constant dense<0.000000e+00> : vector<8x512xf32>
    %158 = tpu.matmul %156, %157, %cst_105 {dimension_numbers = #tpu.dot_dimension_numbers<[1], [0], [0], [1], [0, 0, 1, 1], [], []>} : vector<8x8xbf16>, vector<8x512xbf16>, vector<8x512xf32> -> vector<8x512xf32>
    %159 = arith.addf %150, %158 : vector<8x512xf32>
    %c495_i32_106 = arith.constant 495 : i32
    %160 = tpu.dynamic_rotate %85 by %c495_i32_106 dim 1 : vector<8x512xf32>, i32 -> vector<8x512xf32>
    %c8_107 = arith.constant 8 : index
    %c0_108 = arith.constant 0 : index
    %161 = vector.load %arg2[%c8_107, %c0_108] : memref<9x512xf32, #tpu.memory_space<vmem>>, vector<1x512xf32>
    %162 = vector.broadcast %161 : vector<1x512xf32> to vector<8x512xf32>
    %163 = arith.mulf %160, %162 : vector<8x512xf32>
    %c8_109 = arith.constant 8 : index
    %c0_110 = arith.constant 0 : index
    %c0_111 = arith.constant 0 : index
    %164 = vector.load %arg5[%c8_109, %c0_110, %c0_111] : memref<9x8x8xbf16, #tpu.memory_space<vmem>>, vector<1x8x8xbf16>
    %165 = vector.shape_cast %164 : vector<1x8x8xbf16> to vector<8x8xbf16>
    %166 = arith.truncf %163 : vector<8x512xf32> to vector<8x512xbf16>
    %cst_112 = arith.constant dense<0.000000e+00> : vector<8x512xf32>
    %167 = tpu.matmul %165, %166, %cst_112 {dimension_numbers = #tpu.dot_dimension_numbers<[1], [0], [0], [1], [0, 0, 1, 1], [], []>} : vector<8x8xbf16>, vector<8x512xbf16>, vector<8x512xf32> -> vector<8x512xf32>
    %168 = arith.addf %159, %167 : vector<8x512xf32>
    %cst_113 = arith.constant 0.000000e+00 : f32
    %169 = vector.broadcast %cst_113 : f32 to vector<8x512xf32>
    %170 = arith.maximumf %168, %169 : vector<8x512xf32>
    %c0_114 = arith.constant 0 : index
    %c0_115 = arith.constant 0 : index
    %171 = vector.load %arg8[%c0_114, %c0_115] : memref<2x1xf32, #tpu.memory_space<vmem>>, vector<2x1xf32>
    %172 = vector.shape_cast %171 : vector<2x1xf32> to vector<2x1xf32>
    %173 = vector.broadcast %172 : vector<2x1xf32> to vector<2x512xf32>
    %c17_i32_116 = arith.constant 17 : i32
    %174 = tpu.dynamic_rotate %170 by %c17_i32_116 dim 1 : vector<8x512xf32>, i32 -> vector<8x512xf32>
    %c0_117 = arith.constant 0 : index
    %c0_118 = arith.constant 0 : index
    %175 = vector.load %arg2[%c0_117, %c0_118] : memref<9x512xf32, #tpu.memory_space<vmem>>, vector<1x512xf32>
    %176 = vector.broadcast %175 : vector<1x512xf32> to vector<8x512xf32>
    %177 = arith.mulf %174, %176 : vector<8x512xf32>
    %c0_119 = arith.constant 0 : index
    %c0_120 = arith.constant 0 : index
    %c0_121 = arith.constant 0 : index
    %178 = vector.load %arg7[%c0_119, %c0_120, %c0_121] : memref<9x2x8xbf16, #tpu.memory_space<vmem>>, vector<1x2x8xbf16>
    %179 = vector.shape_cast %178 : vector<1x2x8xbf16> to vector<2x8xbf16>
    %180 = arith.truncf %177 : vector<8x512xf32> to vector<8x512xbf16>
    %cst_122 = arith.constant dense<0.000000e+00> : vector<2x512xf32>
    %181 = tpu.matmul %179, %180, %cst_122 {dimension_numbers = #tpu.dot_dimension_numbers<[1], [0], [0], [1], [0, 0, 1, 1], [], []>} : vector<2x8xbf16>, vector<8x512xbf16>, vector<2x512xf32> -> vector<2x512xf32>
    %182 = arith.addf %173, %181 : vector<2x512xf32>
    %c16_i32_123 = arith.constant 16 : i32
    %183 = tpu.dynamic_rotate %170 by %c16_i32_123 dim 1 : vector<8x512xf32>, i32 -> vector<8x512xf32>
    %c1_124 = arith.constant 1 : index
    %c0_125 = arith.constant 0 : index
    %184 = vector.load %arg2[%c1_124, %c0_125] : memref<9x512xf32, #tpu.memory_space<vmem>>, vector<1x512xf32>
    %185 = vector.broadcast %184 : vector<1x512xf32> to vector<8x512xf32>
    %186 = arith.mulf %183, %185 : vector<8x512xf32>
    %c1_126 = arith.constant 1 : index
    %c0_127 = arith.constant 0 : index
    %c0_128 = arith.constant 0 : index
    %187 = vector.load %arg7[%c1_126, %c0_127, %c0_128] : memref<9x2x8xbf16, #tpu.memory_space<vmem>>, vector<1x2x8xbf16>
    %188 = vector.shape_cast %187 : vector<1x2x8xbf16> to vector<2x8xbf16>
    %189 = arith.truncf %186 : vector<8x512xf32> to vector<8x512xbf16>
    %cst_129 = arith.constant dense<0.000000e+00> : vector<2x512xf32>
    %190 = tpu.matmul %188, %189, %cst_129 {dimension_numbers = #tpu.dot_dimension_numbers<[1], [0], [0], [1], [0, 0, 1, 1], [], []>} : vector<2x8xbf16>, vector<8x512xbf16>, vector<2x512xf32> -> vector<2x512xf32>
    %191 = arith.addf %182, %190 : vector<2x512xf32>
    %c15_i32_130 = arith.constant 15 : i32
    %192 = tpu.dynamic_rotate %170 by %c15_i32_130 dim 1 : vector<8x512xf32>, i32 -> vector<8x512xf32>
    %c2_131 = arith.constant 2 : index
    %c0_132 = arith.constant 0 : index
    %193 = vector.load %arg2[%c2_131, %c0_132] : memref<9x512xf32, #tpu.memory_space<vmem>>, vector<1x512xf32>
    %194 = vector.broadcast %193 : vector<1x512xf32> to vector<8x512xf32>
    %195 = arith.mulf %192, %194 : vector<8x512xf32>
    %c2_133 = arith.constant 2 : index
    %c0_134 = arith.constant 0 : index
    %c0_135 = arith.constant 0 : index
    %196 = vector.load %arg7[%c2_133, %c0_134, %c0_135] : memref<9x2x8xbf16, #tpu.memory_space<vmem>>, vector<1x2x8xbf16>
    %197 = vector.shape_cast %196 : vector<1x2x8xbf16> to vector<2x8xbf16>
    %198 = arith.truncf %195 : vector<8x512xf32> to vector<8x512xbf16>
    %cst_136 = arith.constant dense<0.000000e+00> : vector<2x512xf32>
    %199 = tpu.matmul %197, %198, %cst_136 {dimension_numbers = #tpu.dot_dimension_numbers<[1], [0], [0], [1], [0, 0, 1, 1], [], []>} : vector<2x8xbf16>, vector<8x512xbf16>, vector<2x512xf32> -> vector<2x512xf32>
    %200 = arith.addf %191, %199 : vector<2x512xf32>
    %c1_i32_137 = arith.constant 1 : i32
    %201 = tpu.dynamic_rotate %170 by %c1_i32_137 dim 1 : vector<8x512xf32>, i32 -> vector<8x512xf32>
    %c3_138 = arith.constant 3 : index
    %c0_139 = arith.constant 0 : index
    %202 = vector.load %arg2[%c3_138, %c0_139] : memref<9x512xf32, #tpu.memory_space<vmem>>, vector<1x512xf32>
    %203 = vector.broadcast %202 : vector<1x512xf32> to vector<8x512xf32>
    %204 = arith.mulf %201, %203 : vector<8x512xf32>
    %c3_140 = arith.constant 3 : index
    %c0_141 = arith.constant 0 : index
    %c0_142 = arith.constant 0 : index
    %205 = vector.load %arg7[%c3_140, %c0_141, %c0_142] : memref<9x2x8xbf16, #tpu.memory_space<vmem>>, vector<1x2x8xbf16>
    %206 = vector.shape_cast %205 : vector<1x2x8xbf16> to vector<2x8xbf16>
    %207 = arith.truncf %204 : vector<8x512xf32> to vector<8x512xbf16>
    %cst_143 = arith.constant dense<0.000000e+00> : vector<2x512xf32>
    %208 = tpu.matmul %206, %207, %cst_143 {dimension_numbers = #tpu.dot_dimension_numbers<[1], [0], [0], [1], [0, 0, 1, 1], [], []>} : vector<2x8xbf16>, vector<8x512xbf16>, vector<2x512xf32> -> vector<2x512xf32>
    %209 = arith.addf %200, %208 : vector<2x512xf32>
    %c4_144 = arith.constant 4 : index
    %c0_145 = arith.constant 0 : index
    %210 = vector.load %arg2[%c4_144, %c0_145] : memref<9x512xf32, #tpu.memory_space<vmem>>, vector<1x512xf32>
    %211 = vector.broadcast %210 : vector<1x512xf32> to vector<8x512xf32>
    %212 = arith.mulf %170, %211 : vector<8x512xf32>
    %c4_146 = arith.constant 4 : index
    %c0_147 = arith.constant 0 : index
    %c0_148 = arith.constant 0 : index
    %213 = vector.load %arg7[%c4_146, %c0_147, %c0_148] : memref<9x2x8xbf16, #tpu.memory_space<vmem>>, vector<1x2x8xbf16>
    %214 = vector.shape_cast %213 : vector<1x2x8xbf16> to vector<2x8xbf16>
    %215 = arith.truncf %212 : vector<8x512xf32> to vector<8x512xbf16>
    %cst_149 = arith.constant dense<0.000000e+00> : vector<2x512xf32>
    %216 = tpu.matmul %214, %215, %cst_149 {dimension_numbers = #tpu.dot_dimension_numbers<[1], [0], [0], [1], [0, 0, 1, 1], [], []>} : vector<2x8xbf16>, vector<8x512xbf16>, vector<2x512xf32> -> vector<2x512xf32>
    %217 = arith.addf %209, %216 : vector<2x512xf32>
    %c511_i32_150 = arith.constant 511 : i32
    %218 = tpu.dynamic_rotate %170 by %c511_i32_150 dim 1 : vector<8x512xf32>, i32 -> vector<8x512xf32>
    %c5_151 = arith.constant 5 : index
    %c0_152 = arith.constant 0 : index
    %219 = vector.load %arg2[%c5_151, %c0_152] : memref<9x512xf32, #tpu.memory_space<vmem>>, vector<1x512xf32>
    %220 = vector.broadcast %219 : vector<1x512xf32> to vector<8x512xf32>
    %221 = arith.mulf %218, %220 : vector<8x512xf32>
    %c5_153 = arith.constant 5 : index
    %c0_154 = arith.constant 0 : index
    %c0_155 = arith.constant 0 : index
    %222 = vector.load %arg7[%c5_153, %c0_154, %c0_155] : memref<9x2x8xbf16, #tpu.memory_space<vmem>>, vector<1x2x8xbf16>
    %223 = vector.shape_cast %222 : vector<1x2x8xbf16> to vector<2x8xbf16>
    %224 = arith.truncf %221 : vector<8x512xf32> to vector<8x512xbf16>
    %cst_156 = arith.constant dense<0.000000e+00> : vector<2x512xf32>
    %225 = tpu.matmul %223, %224, %cst_156 {dimension_numbers = #tpu.dot_dimension_numbers<[1], [0], [0], [1], [0, 0, 1, 1], [], []>} : vector<2x8xbf16>, vector<8x512xbf16>, vector<2x512xf32> -> vector<2x512xf32>
    %226 = arith.addf %217, %225 : vector<2x512xf32>
    %c497_i32_157 = arith.constant 497 : i32
    %227 = tpu.dynamic_rotate %170 by %c497_i32_157 dim 1 : vector<8x512xf32>, i32 -> vector<8x512xf32>
    %c6_158 = arith.constant 6 : index
    %c0_159 = arith.constant 0 : index
    %228 = vector.load %arg2[%c6_158, %c0_159] : memref<9x512xf32, #tpu.memory_space<vmem>>, vector<1x512xf32>
    %229 = vector.broadcast %228 : vector<1x512xf32> to vector<8x512xf32>
    %230 = arith.mulf %227, %229 : vector<8x512xf32>
    %c6_160 = arith.constant 6 : index
    %c0_161 = arith.constant 0 : index
    %c0_162 = arith.constant 0 : index
    %231 = vector.load %arg7[%c6_160, %c0_161, %c0_162] : memref<9x2x8xbf16, #tpu.memory_space<vmem>>, vector<1x2x8xbf16>
    %232 = vector.shape_cast %231 : vector<1x2x8xbf16> to vector<2x8xbf16>
    %233 = arith.truncf %230 : vector<8x512xf32> to vector<8x512xbf16>
    %cst_163 = arith.constant dense<0.000000e+00> : vector<2x512xf32>
    %234 = tpu.matmul %232, %233, %cst_163 {dimension_numbers = #tpu.dot_dimension_numbers<[1], [0], [0], [1], [0, 0, 1, 1], [], []>} : vector<2x8xbf16>, vector<8x512xbf16>, vector<2x512xf32> -> vector<2x512xf32>
    %235 = arith.addf %226, %234 : vector<2x512xf32>
    %c496_i32_164 = arith.constant 496 : i32
    %236 = tpu.dynamic_rotate %170 by %c496_i32_164 dim 1 : vector<8x512xf32>, i32 -> vector<8x512xf32>
    %c7_165 = arith.constant 7 : index
    %c0_166 = arith.constant 0 : index
    %237 = vector.load %arg2[%c7_165, %c0_166] : memref<9x512xf32, #tpu.memory_space<vmem>>, vector<1x512xf32>
    %238 = vector.broadcast %237 : vector<1x512xf32> to vector<8x512xf32>
    %239 = arith.mulf %236, %238 : vector<8x512xf32>
    %c7_167 = arith.constant 7 : index
    %c0_168 = arith.constant 0 : index
    %c0_169 = arith.constant 0 : index
    %240 = vector.load %arg7[%c7_167, %c0_168, %c0_169] : memref<9x2x8xbf16, #tpu.memory_space<vmem>>, vector<1x2x8xbf16>
    %241 = vector.shape_cast %240 : vector<1x2x8xbf16> to vector<2x8xbf16>
    %242 = arith.truncf %239 : vector<8x512xf32> to vector<8x512xbf16>
    %cst_170 = arith.constant dense<0.000000e+00> : vector<2x512xf32>
    %243 = tpu.matmul %241, %242, %cst_170 {dimension_numbers = #tpu.dot_dimension_numbers<[1], [0], [0], [1], [0, 0, 1, 1], [], []>} : vector<2x8xbf16>, vector<8x512xbf16>, vector<2x512xf32> -> vector<2x512xf32>
    %244 = arith.addf %235, %243 : vector<2x512xf32>
    %c495_i32_171 = arith.constant 495 : i32
    %245 = tpu.dynamic_rotate %170 by %c495_i32_171 dim 1 : vector<8x512xf32>, i32 -> vector<8x512xf32>
    %c8_172 = arith.constant 8 : index
    %c0_173 = arith.constant 0 : index
    %246 = vector.load %arg2[%c8_172, %c0_173] : memref<9x512xf32, #tpu.memory_space<vmem>>, vector<1x512xf32>
    %247 = vector.broadcast %246 : vector<1x512xf32> to vector<8x512xf32>
    %248 = arith.mulf %245, %247 : vector<8x512xf32>
    %c8_174 = arith.constant 8 : index
    %c0_175 = arith.constant 0 : index
    %c0_176 = arith.constant 0 : index
    %249 = vector.load %arg7[%c8_174, %c0_175, %c0_176] : memref<9x2x8xbf16, #tpu.memory_space<vmem>>, vector<1x2x8xbf16>
    %250 = vector.shape_cast %249 : vector<1x2x8xbf16> to vector<2x8xbf16>
    %251 = arith.truncf %248 : vector<8x512xf32> to vector<8x512xbf16>
    %cst_177 = arith.constant dense<0.000000e+00> : vector<2x512xf32>
    %252 = tpu.matmul %250, %251, %cst_177 {dimension_numbers = #tpu.dot_dimension_numbers<[1], [0], [0], [1], [0, 0, 1, 1], [], []>} : vector<2x8xbf16>, vector<8x512xbf16>, vector<2x512xf32> -> vector<2x512xf32>
    %253 = arith.addf %244, %252 : vector<2x512xf32>
    %cst_178 = arith.constant 0.000000e+00 : f32
    %254 = vector.broadcast %cst_178 : f32 to vector<2x512xf32>
    %255 = arith.subf %254, %253 : vector<2x512xf32>
    %256 = math.exp %255 : vector<2x512xf32>
    %cst_179 = arith.constant 1.000000e+00 : f32
    %257 = vector.broadcast %cst_179 : f32 to vector<2x512xf32>
    %258 = arith.addf %257, %256 : vector<2x512xf32>
    %259 = tpu.reciprocal %258 {approx = true} : vector<2x512xf32> -> vector<2x512xf32>
    %c0_180 = arith.constant 0 : index
    %c0_181 = arith.constant 0 : index
    %260 = vector.load %arg9[%c0_180, %c0_181] : memref<2x512xf32, #tpu.memory_space<vmem>>, vector<2x512xf32>
    tpu.vector_store %arg9[%c0_180, %c0_181], %259 {strides = array<i32>} : memref<2x512xf32, #tpu.memory_space<vmem>>, vector<2x512xf32>,
    return
  }
  func.func @transform_0(%arg0: i32) -> (i32, i32) {
    %c0_i32 = arith.constant 0 : i32
    %c0_i32_0 = arith.constant 0 : i32
    %c0_i32_1 = arith.constant 0 : i32
    return %c0_i32, %c0_i32_0 : i32, i32
  }
  func.func @transform_1(%arg0: i32) -> (i32, i32) {
    %c0_i32 = arith.constant 0 : i32
    %c0_i32_0 = arith.constant 0 : i32
    %c0_i32_1 = arith.constant 0 : i32
    return %c0_i32, %c0_i32_0 : i32, i32
  }
  func.func @transform_2(%arg0: i32) -> (i32, i32, i32) {
    %c0_i32 = arith.constant 0 : i32
    %c0_i32_0 = arith.constant 0 : i32
    %c0_i32_1 = arith.constant 0 : i32
    %c0_i32_2 = arith.constant 0 : i32
    return %c0_i32, %c0_i32_0, %c0_i32_1 : i32, i32, i32
  }
  func.func @transform_3(%arg0: i32) -> (i32, i32) {
    %c0_i32 = arith.constant 0 : i32
    %c0_i32_0 = arith.constant 0 : i32
    %c0_i32_1 = arith.constant 0 : i32
    return %c0_i32, %c0_i32_0 : i32, i32
  }
  func.func @transform_4(%arg0: i32) -> (i32, i32, i32) {
    %c0_i32 = arith.constant 0 : i32
    %c0_i32_0 = arith.constant 0 : i32
    %c0_i32_1 = arith.constant 0 : i32
    %c0_i32_2 = arith.constant 0 : i32
    return %c0_i32, %c0_i32_0, %c0_i32_1 : i32, i32, i32
  }
  func.func @transform_5(%arg0: i32) -> (i32, i32) {
    %c0_i32 = arith.constant 0 : i32
    %c0_i32_0 = arith.constant 0 : i32
    %c0_i32_1 = arith.constant 0 : i32
    return %c0_i32, %c0_i32_0 : i32, i32
  }
  func.func @transform_6(%arg0: i32) -> (i32, i32, i32) {
    %c0_i32 = arith.constant 0 : i32
    %c0_i32_0 = arith.constant 0 : i32
    %c0_i32_1 = arith.constant 0 : i32
    %c0_i32_2 = arith.constant 0 : i32
    return %c0_i32, %c0_i32_0, %c0_i32_1 : i32, i32, i32
  }
  func.func @transform_7(%arg0: i32) -> (i32, i32) {
    %c0_i32 = arith.constant 0 : i32
    %c0_i32_0 = arith.constant 0 : i32
    %c0_i32_1 = arith.constant 0 : i32
    return %c0_i32, %c0_i32_0 : i32, i32
  }
  func.func @transform_8(%arg0: i32) -> (i32, i32) {
    %c0_i32 = arith.constant 0 : i32
    %c0_i32_0 = arith.constant 0 : i32
    %c0_i32_1 = arith.constant 0 : i32
    return %c0_i32, %c0_i32_0 : i32, i32
  }
}

</mosaic_0001>

<bundles_post_ra>
// kernel: relu_cnn_forward.1
= control target key start
LH: loop header
LB: loop body
LE: loop exit
PB: predicated region body
PF: predicated region fallthrough
CT: control target
= control target key end

     0   :  { %s2847_s9 = smov 17   ;;  %s2848_s10 = smov 16   ;;  %v48_v6 = vlaneseq  ;;  %vm78_vm3 = vcmask 1043456   ;;  %vm74_vm4 = vcmask 64512   ;;  %v2855_v62 = vmov 0   ;;  %s3874_s0 = inlined_call_operand.vmem [shape: f32[8,512], index: 0, kind: input, shape index: {}]   ;;  %s3875_s1 = inlined_call_operand.vmem [shape: f32[9,512], index: 1, kind: input, shape index: {}]   ;;  %s3876_s2 = inlined_call_operand.vmem [shape: bf16[9,8,8], index: 2, kind: input, shape index: {}]   ;;  %s3877_s3 = inlined_call_operand.vmem [shape: f32[8,1], index: 3, kind: input, shape index: {}]   ;;  %s3878_s5 = inlined_call_operand.vmem [shape: f32[8,1], index: 5, kind: input, shape index: {}]   ;;  %s3879_s4 = inlined_call_operand.vmem [shape: bf16[9,8,8], index: 4, kind: input, shape index: {}]   ;;  %s3880_s7 = inlined_call_operand.vmem [shape: f32[2,1], index: 7, kind: input, shape index: {}]   ;;  %s3881_s6 = inlined_call_operand.vmem [shape: bf16[9,2,8], index: 6, kind: input, shape index: {}]   ;;  %s3882_s8 = inlined_call_operand.vmem [shape: f32[2,512], index: 8, kind: output, shape index: {}]  }
   0x1   :  { %v2904_v0 = vld [vmem:[%s3874_s0 + $0x18] sm:$0xff]  ;;  %v2909_v1 = vld [vmem:[%s3874_s0 + $0x8] sm:$0xff]  ;;  %v2920_v2 = vld [vmem:[%s3874_s0 + $0x10] sm:$0xff]  ;;  %s2849_s15 = smov 15   ;;  %s2851_s16 = smov 127   ;;  %2829 = vset.pattern.permute.xlu2 %v2855_v62  ;;  %2830 = vset.pattern.permute.xlu0 %v2855_v62  ;;  %vm2669_vm10 = vcmask 1041408  }
   0x2   :  { %46 = vrot.lane.b32.xlu1 %v2904_v0, %s2847_s9  ;;  %42 = vrot.lane.b32.xlu0 %v2909_v1, %s2847_s9  ;;  %v2925_v3 = vld [vmem:[%s3874_s0] sm:$0xff]  ;;  %s2850_s0 = smov 1   ;;  %s2852_s17 = smov 113   ;;  %v2987_v8 = vand.u32 127, %v48_v6  ;;  %vm2671_vm11 = vcmask 1045508  }
   0x3   :  { %149 = vrot.lane.b32.xlu2 %v2909_v1, %s2848_s10  ;;  %s2853_s18 = smov 112   ;;  %s2854_s19 = smov 111   ;;  %v2684_v9 = vld [vmem:[%s3875_s1 + $0x1] ss:$8 sm:$0xf] }
   0x4   :  { %vm155_vm0 = vcmp.lt.s32.totalorder %v2987_v8, 16  ;;  %v2993_v12 = vperm.slane %v2684_v9, 2  ;;  %v55_v14 = vld [vmem:[%s3875_s1] ss:$8 sm:$0xf]  ;;  %vm50_vm1 = vcmp.lt.s32.totalorder %v2987_v8, 17 }
   0x5   :  { %vm260_vm2 = vcmp.lt.s32.totalorder %v2987_v8, 15  ;;  %v3006_v16 = vld [vmem:[%s3875_s1 + $0x2] ss:$8 sm:$0xf]  ;;  %v3010_v18 = vperm.slane %v55_v14, 0  ;;  %v3012_v19 = vperm.slane %v55_v14, 1 }
   0x6   :  { %v3014_v20 = vperm.slane %v55_v14, 2  ;;  %v3016_v21 = vperm.slane %v55_v14, 3  ;;  %v3019_v25 = vperm.slane %v3006_v16, 1  ;;  %v3037_v35 = vperm.slane %v2684_v9, 1  ;;  %v69_v48 = vld [vmem:[%s3876_s2] sm:$0xf] }
   0x7   :  { %v3040_v41 = vperm.slane %v2684_v9, 0  ;;  %v3042_v42 = vperm.slane %v2684_v9, 3  ;;  %v34_v58 = vld [vmem:[%s3877_s3] sm:$0xff]  ;;  %v3069_v63 = vperm.slane %v3006_v16, 2  ;;  %vm365_vm5 = vcmp.lt.s32.totalorder %v2987_v8, 1 }
   0x8   :  { %vm562_vm6 = vcmp.lt.s32.totalorder %v2987_v8, 127  ;;  %vm667_vm7 = vcmp.lt.s32.totalorder %v2987_v8, 113  ;;  %vm772_vm8 = vcmp.lt.s32.totalorder %v2987_v8, 112  ;;  %vm877_vm9 = vcmp.lt.s32.totalorder %v2987_v8, 111 }
   0xa   :  { %44 = vrot.lane.b32.xlu0 %v2920_v2, %s2847_s9  ;;  %40 = vrot.lane.b32.xlu1 %v2925_v3, %s2847_s9 }
   0xb   :  { %151 = vrot.lane.b32.xlu2 %v2920_v2, %s2848_s10 }
  0x12   :  { %147 = vrot.lane.b32.xlu1 %v2925_v3, %s2848_s10  ;;  %153 = vrot.lane.b32.xlu0 %v2904_v0, %s2848_s10 }
  0x13   :  { %254 = vrot.lane.b32.xlu2 %v2909_v1, %s2849_s15 }
  0x1a   :  { %256 = vrot.lane.b32.xlu0 %v2920_v2, %s2849_s15  ;;  %258 = vrot.lane.b32.xlu1 %v2904_v0, %s2849_s15 }
  0x1b   :  { %252 = vrot.lane.b32.xlu2 %v2925_v3, %s2849_s15 }
  0x22   :  { %359 = vrot.lane.b32.xlu0 %v2909_v1, %s2850_s0  ;;  %361 = vrot.lane.b32.xlu1 %v2920_v2, %s2850_s0 }
  0x23   :  { %363 = vrot.lane.b32.xlu2 %v2904_v0, %s2850_s0 }
  0x2a   :  { %357 = vrot.lane.b32.xlu0 %v2925_v3, %s2850_s0  ;;  %554 = vrot.lane.b32.xlu1 %v2925_v3, %s2851_s16 }
  0x2b   :  { %558 = vrot.lane.b32.xlu2 %v2920_v2, %s2851_s16 }
  0x32   :  { %560 = vrot.lane.b32.xlu0 %v2904_v0, %s2851_s16  ;;  %556 = vrot.lane.b32.xlu1 %v2909_v1, %s2851_s16 }
  0x33   :  { %659 = vrot.lane.b32.xlu2 %v2925_v3, %s2852_s17 }
  0x3a   :  { %663 = vrot.lane.b32.xlu0 %v2920_v2, %s2852_s17  ;;  %665 = vrot.lane.b32.xlu1 %v2904_v0, %s2852_s17 }
  0x3b   :  { %661 = vrot.lane.b32.xlu2 %v2909_v1, %s2852_s17 }
  0x42   :  { %764 = vrot.lane.b32.xlu0 %v2925_v3, %s2853_s18  ;;  %768 = vrot.lane.b32.xlu1 %v2920_v2, %s2853_s18 }
  0x43   :  { %770 = vrot.lane.b32.xlu2 %v2904_v0, %s2853_s18 }
  0x4a   :  { %766 = vrot.lane.b32.xlu0 %v2909_v1, %s2853_s18  ;;  %869 = vrot.lane.b32.xlu1 %v2925_v3, %s2854_s19 }
  0x4b   :  { %873 = vrot.lane.b32.xlu2 %v2920_v2, %s2854_s19 }
  0x52   :  { %875 = vrot.lane.b32.xlu0 %v2904_v0, %s2854_s19  ;;  %871 = vrot.lane.b32.xlu1 %v2909_v1, %s2854_s19 }
  0x53   :  { %37 = vperm.xlu2 %2829, %v34_v58  }
  0x5d   :  { %v150_v4 = vpop.permute.xlu2 %149 }
  0x65   :  { %v152_v5 = vpop.permute.xlu2 %151 }
  0x66   :  { %v157_v13 = vsel %vm155_vm0, %v150_v4, %v152_v5 }
  0x67   :  { %v173_v15 = vmul.f32 %v2993_v12, %v157_v13 }
  0x69   :  { %v179_v24 = vpack.c.bf16 %v173_v15, %v173_v15 }
  0x6b   :  { %v191_v40 = vsel %vm78_vm3, %v179_v24, 0 }
  0x6d   :  { %v2985_v7 = vpop.permute.xlu2 %254 }
  0x74   :  { %v47_v10 = vpop.permute.xlu1 %46  ;;  %v43_v11 = vpop.permute.xlu0 %42 }
  0x75   :  { %v3008_v17 = vpop.permute.xlu2 %252 }
  0x76   :  { %v263_v26 = vsel %vm260_vm2, %v3008_v17, %v2985_v7 }
  0x77   :  { %v277_v43 = vmul.f32 %v3019_v25, %v263_v26 }
  0x79   :  { %v283_v54 = vpack.c.bf16 %v277_v43, %v277_v43 }
  0x7c   :  { %v45_v22 = vpop.permute.xlu0 %44  ;;  %v41_v23 = vpop.permute.xlu1 %40 }
  0x7d   :  { %v51_v27 = vsel %vm50_vm1, %v45_v22, %v47_v10  ;;  %v52_v28 = vsel %vm50_vm1, %v43_v11, %v45_v22  ;;  %v53_v29 = vsel %vm50_vm1, %v41_v23, %v43_v11  ;;  %v54_v30 = vsel %vm50_vm1, %v47_v10, %v41_v23 }
  0x7e   :  { %v65_v31 = vmul.f32 %v3010_v18, %v54_v30  ;;  %v66_v32 = vmul.f32 %v3012_v19, %v53_v29  ;;  %v67_v33 = vmul.f32 %v3014_v20, %v52_v28  ;;  %v68_v34 = vmul.f32 %v3016_v21, %v51_v27  ;;  %v2696_v27 = vld [vmem:[%s3875_s1 + $0x3] ss:$8 sm:$0xf] }
  0x7f   :  { %v3079_v11 = vperm.slane %v3006_v16, 3  ;;  %v3096_v30 = vperm.slane %v2696_v27, 2 }
  0x80   :  { %v70_v36 = vpack.c.bf16 %v65_v31, %v65_v31  ;;  %v71_v37 = vpack.c.bf16 %v66_v32, %v66_v32  ;;  %v72_v38 = vpack.c.bf16 %v67_v33, %v67_v33  ;;  %v73_v39 = vpack.c.bf16 %v68_v34, %v68_v34  ;;  %v364_v34 = vpop.permute.xlu2 %363 }
  0x81   :  { %v3101_v33 = vperm.slane %v2696_v27, 3 }
  0x82   :  { %v80_v44 = vsel %vm78_vm3, %v70_v36, 0  ;;  %v83_v45 = vsel %vm78_vm3, %v71_v37, 0  ;;  %v86_v46 = vsel %vm78_vm3, %v72_v38, 0  ;;  %v89_v47 = vsel %vm78_vm3, %v73_v39, 0  ;;  %v2685_v36 = vld [vmem:[%s3876_s2 + $0x4] sm:$0xf] }
  0x83   :  { %98 = vmatpush.bf16.msra.mxu0 %v80_v44  ;;  %111 = vmatpush.bf16.msra.mxu1 %v83_v45  ;;  %v2702_v45 = vld [vmem:[%s3875_s1 + $0x4] ss:$8 sm:$0xf] }
  0x84   :  { %124 = vmatpush.bf16.msra.mxu2 %v86_v46  ;;  %137 = vmatpush.bf16.msra.mxu3 %v89_v47  ;;  %v148_v49 = vpop.permute.xlu1 %147  ;;  %v154_v50 = vpop.permute.xlu0 %153 }
  0x85   :  { %v158_v51 = vsel %vm155_vm0, %v148_v49, %v150_v4  ;;  %v156_v52 = vsel %vm155_vm0, %v152_v5, %v154_v50  ;;  %v159_v53 = vsel %vm155_vm0, %v154_v50, %v148_v49  ;;  %v3072_v4 = vperm.slane %v3006_v16, 0 }
  0x86   :  { %v172_v55 = vmul.f32 %v3037_v35, %v158_v51  ;;  %2680 = vmatmul.msk.bf16.vlgmr.msra.gmra.mxu0 %vm74_vm4, %v69_v48  ;;  %2681 = vmatmul.msk.bf16.vlgmr.msra.gmra.mxu1 %vm74_vm4, %v69_v48  ;;  %v171_v56 = vmul.f32 %v3040_v41, %v159_v53  ;;  %v174_v57 = vmul.f32 %v3042_v42, %v156_v52  ;;  %v293_v5 = vsel %vm78_vm3, %v283_v54, 0 }
  0x87   :  { %2682 = vmatmul.msk.bf16.vlgmr.msra.gmra.mxu2 %vm74_vm4, %v69_v48  ;;  %2683 = vmatmul.msk.bf16.vlgmr.msra.gmra.mxu3 %vm74_vm4, %v69_v48  ;;  %v3119_v48 = vperm.slane %v2696_v27, 1  ;;  %v3121_v49 = vperm.slane %v2696_v27, 0  ;;  %v3123_v50 = vperm.slane %v2702_v45, 0  ;;  %v3125_v51 = vperm.slane %v2702_v45, 1 }
  0x88   :  { %229 = vmatpush.bf16.msrb.mxu2 %v191_v40  ;;  %v178_v59 = vpack.c.bf16 %v172_v55, %v172_v55  ;;  %v177_v60 = vpack.c.bf16 %v171_v56, %v171_v56  ;;  %v180_v61 = vpack.c.bf16 %v174_v57, %v174_v57  ;;  %v3129_v54 = vperm.slane %v2702_v45, 2 }
  0x89   :  { %v3131_v55 = vperm.slane %v2702_v45, 3 }
  0x8a   :  { %v188_v6 = vsel %vm78_vm3, %v178_v59, 0  ;;  %v185_v9 = vsel %vm78_vm3, %v177_v60, 0  ;;  %v194_v10 = vsel %vm78_vm3, %v180_v61, 0  ;;  %v473_v60 = vmul.f32 %v3123_v50, %v2925_v3 }
  0x8b   :  { %216 = vmatpush.bf16.msrb.mxu1 %v188_v6  ;;  %203 = vmatpush.bf16.msrb.mxu0 %v185_v9  ;;  %v474_v61 = vmul.f32 %v3125_v51, %v2909_v1  ;;  %v475_v6 = vmul.f32 %v3129_v54, %v2920_v2  ;;  %v476_v9 = vmul.f32 %v3131_v55, %v2904_v0  ;;  %v559_v2 = vpop.permute.xlu2 %558 }
  0x8c   :  { %242 = vmatpush.bf16.msrb.mxu3 %v194_v10  ;;  %v257_v13 = vpop.permute.xlu0 %256  ;;  %v259_v14 = vpop.permute.xlu1 %258 }
  0x8d   :  { %v262_v15 = vsel %vm260_vm2, %v2985_v7, %v257_v13  ;;  %v261_v22 = vsel %vm260_vm2, %v257_v13, %v259_v14  ;;  %v264_v23 = vsel %vm260_vm2, %v259_v14, %v3008_v17  ;;  %v479_v14 = vpack.c.bf16 %v473_v60, %v473_v60 }
  0x8e   :  { %v278_v16 = vmul.f32 %v3069_v63, %v262_v15  ;;  %v276_v24 = vmul.f32 %v3072_v4, %v264_v23  ;;  %v279_v26 = vmul.f32 %v3079_v11, %v261_v22  ;;  %v480_v15 = vpack.c.bf16 %v474_v61, %v474_v61 }
  0x8f   :  { %321 = vmatpush.bf16.msra.mxu1 %v293_v5  ;;  %v481_v23 = vpack.c.bf16 %v475_v6, %v475_v6  ;;  %v482_v1 = vpack.c.bf16 %v476_v9, %v476_v9 }
  0x90   :  { %v284_v28 = vpack.c.bf16 %v278_v16, %v278_v16  ;;  %v282_v29 = vpack.c.bf16 %v276_v24, %v276_v24  ;;  %v285_v7 = vpack.c.bf16 %v279_v26, %v279_v26  ;;  %v2691_v16 = vld [vmem:[%s3876_s2 + $0x8] sm:$0xf]  ;;  %v487_v24 = vsel %vm78_vm3, %v479_v14, 0 }
  0x91   :  { %v490_v0 = vsel %vm78_vm3, %v480_v15, 0  ;;  %v493_v26 = vsel %vm78_vm3, %v481_v23, 0  ;;  %v496_v27 = vsel %vm78_vm3, %v482_v1, 0 }
  0x92   :  { %v296_v31 = vsel %vm78_vm3, %v284_v28, 0  ;;  %v290_v17 = vsel %vm78_vm3, %v282_v29, 0  ;;  %v299_v32 = vsel %vm78_vm3, %v285_v7, 0  ;;  %v2708_v28 = vld [vmem:[%s3875_s1 + $0x5] ss:$8 sm:$0xf] }
  0x93   :  { %334 = vmatpush.bf16.msra.mxu2 %v296_v31  ;;  %308 = vmatpush.bf16.msra.mxu0 %v290_v17  ;;  %v3164_v31 = vperm.slane %v2708_v28, 3  ;;  %v3166_v17 = vperm.slane %v2708_v28, 0 }
  0x94   :  { %v360_v37 = vpop.permute.xlu0 %359  ;;  %347 = vmatpush.bf16.msra.mxu3 %v299_v32  ;;  %v362_v38 = vpop.permute.xlu1 %361 }
  0x95   :  { %v367_v39 = vsel %vm365_vm5, %v360_v37, %v362_v38  ;;  %v366_v40 = vsel %vm365_vm5, %v362_v38, %v364_v34 }
  0x96   :  { %2686 = vmatmul.msk.bf16.vlgmr.msrb.gmra.mxu0 %vm74_vm4, %v2685_v36  ;;  %2687 = vmatmul.msk.bf16.vlgmr.msrb.gmra.mxu1 %vm74_vm4, %v2685_v36  ;;  %v383_v43 = vmul.f32 %v3096_v30, %v367_v39  ;;  %v384_v44 = vmul.f32 %v3101_v33, %v366_v40 }
  0x97   :  { %2688 = vmatmul.msk.bf16.vlgmr.msrb.gmra.mxu2 %vm74_vm4, %v2685_v36  ;;  %2689 = vmatmul.msk.bf16.vlgmr.msrb.gmra.mxu3 %vm74_vm4, %v2685_v36  ;;  %v3172_v36 = vperm.slane %v2708_v28, 1 }
  0x98   :  { %v389_v46 = vpack.c.bf16 %v383_v43, %v383_v43  ;;  %v390_v47 = vpack.c.bf16 %v384_v44, %v384_v44  ;;  %v660_v44 = vpop.permute.xlu2 %659 }
  0x9a   :  { %v401_v52 = vsel %vm78_vm3, %v389_v46, 0  ;;  %v404_v53 = vsel %vm78_vm3, %v390_v47, 0 }
  0x9b   :  { %439 = vmatpush.bf16.msrb.mxu2 %v401_v52  ;;  %452 = vmatpush.bf16.msrb.mxu3 %v404_v53 }
  0x9c   :  { %v358_v56 = vpop.permute.xlu0 %357  ;;  %v555_v59 = vpop.permute.xlu1 %554 }
  0x9d   :  { %v368_v57 = vsel %vm365_vm5, %v358_v56, %v360_v37  ;;  %v369_v58 = vsel %vm365_vm5, %v364_v34, %v358_v56  ;;  %v3170_v34 = vperm.slane %v2708_v28, 2 }
  0x9e   :  { %v382_v62 = vmul.f32 %v3119_v48, %v368_v57  ;;  %v381_v5 = vmul.f32 %v3121_v49, %v369_v58  ;;  %v2697_v57 = vld [vmem:[%s3876_s2 + $0xc] sm:$0xf] }
  0xa0   :  { %v388_v10 = vpack.c.bf16 %v382_v62, %v382_v62  ;;  %v387_v13 = vpack.c.bf16 %v381_v5, %v381_v5  ;;  %v2714_v5 = vld [vmem:[%s3875_s1 + $0x6] ss:$8 sm:$0xf]  ;;  %v662_v6 = vpop.permute.xlu2 %661 }
  0xa1   :  { %v3203_v14 = vperm.slane %v2714_v5, 1  ;;  %v670_v15 = vsel %vm667_vm7, %v660_v44, %v662_v6 }
  0xa2   :  { %v398_v22 = vsel %vm78_vm3, %v388_v10, 0  ;;  %v395_v3 = vsel %vm78_vm3, %v387_v13, 0  ;;  %v3199_v10 = vperm.slane %v2714_v5, 0  ;;  %v3201_v13 = vperm.slane %v2714_v5, 3 }
  0xa3   :  { %426 = vmatpush.bf16.msrb.mxu1 %v398_v22  ;;  %413 = vmatpush.bf16.msrb.mxu0 %v395_v3  ;;  %3908 = vst [vmem:[#allocation4_spill] sm:$0xff] %v3203_v14  ;;  %v3207_v22 = vperm.slane %v2714_v5, 2 }
  0xa4   :  { %v561_v29 = vpop.permute.xlu0 %560  ;;  %v557_v7 = vpop.permute.xlu1 %556  ;;  %3906 = vst [vmem:[#allocation2_spill] sm:$0xff] %v3199_v10 }
  0xa5   :  { %v566_v32 = vsel %vm562_vm6, %v561_v29, %v555_v59  ;;  %v565_v37 = vsel %vm562_vm6, %v555_v59, %v557_v7  ;;  %v563_v38 = vsel %vm562_vm6, %v559_v2, %v561_v29  ;;  %v564_v39 = vsel %vm562_vm6, %v557_v7, %v559_v2  ;;  %3907 = vst [vmem:[#allocation3_spill] sm:$0xff] %v3201_v13 }
  0xa6   :  { %2692 = vmatmul.msk.bf16.vlgmr.msra.gmra.mxu0 %vm74_vm4, %v2691_v16  ;;  %2693 = vmatmul.msk.bf16.vlgmr.msra.gmra.mxu1 %vm74_vm4, %v2691_v16  ;;  %v581_v40 = vmul.f32 %v3164_v31, %v566_v32  ;;  %v578_v43 = vmul.f32 %v3166_v17, %v565_v37  ;;  %v580_v45 = vmul.f32 %v3170_v34, %v563_v38  ;;  %v2703_v32 = vld [vmem:[%s3876_s2 + $0x10] sm:$0xf] }
  0xa7   :  { %2694 = vmatmul.msk.bf16.vlgmr.msra.gmra.mxu2 %vm74_vm4, %v2691_v16  ;;  %2695 = vmatmul.msk.bf16.vlgmr.msra.gmra.mxu3 %vm74_vm4, %v2691_v16  ;;  %v579_v46 = vmul.f32 %v3172_v36, %v564_v39  ;;  %3909 = vst [vmem:[#allocation5_spill] sm:$0xff] %v3207_v22  ;;  %v683_v16 = vmul.f32 %v3199_v10, %v670_v15 }
  0xa8   :  { %505 = vmatpush.bf16.msra.mxu0 %v487_v24  ;;  %518 = vmatpush.bf16.msra.mxu1 %v490_v0  ;;  %v587_v47 = vpack.c.bf16 %v581_v40, %v581_v40  ;;  %v584_v52 = vpack.c.bf16 %v578_v43, %v578_v43  ;;  %v586_v53 = vpack.c.bf16 %v580_v45, %v580_v45  ;;  %v2720_v43 = vld [vmem:[%s3875_s1 + $0x7] ss:$8 sm:$0xf] }
  0xa9   :  { %531 = vmatpush.bf16.msra.mxu2 %v493_v26  ;;  %544 = vmatpush.bf16.msra.mxu3 %v496_v27  ;;  %v585_v56 = vpack.c.bf16 %v579_v46, %v579_v46  ;;  %v689_v27 = vpack.c.bf16 %v683_v16, %v683_v16  ;;  %v2709_v16 = vld [vmem:[%s3876_s2 + $0x14] sm:$0xf] }
  0xaa   :  { %v592_v59 = vsel %vm78_vm3, %v584_v52, 0  ;;  %v601_v60 = vsel %vm78_vm3, %v587_v47, 0  ;;  %v598_v62 = vsel %vm78_vm3, %v586_v53, 0  ;;  %v3234_v47 = vperm.slane %v2720_v43, 0 }
  0xab   :  { %v595_v61 = vsel %vm78_vm3, %v585_v56, 0  ;;  %v697_v37 = vsel %vm78_vm3, %v689_v27, 0  ;;  %v3236_v52 = vperm.slane %v2720_v43, 3  ;;  %v2726_v27 = vld [vmem:[%s3875_s1 + $0x20] ss:$8 sm:$0xf] }
  0xac   :  { %v664_v58 = vpop.permute.xlu0 %663  ;;  %v666_v9 = vpop.permute.xlu1 %665  ;;  %3910 = vst [vmem:[#allocation6_spill] sm:$0xff] %v3234_v47 }
  0xad   :  { %v671_v3 = vsel %vm667_vm7, %v666_v9, %v660_v44  ;;  %v669_v23 = vsel %vm667_vm7, %v662_v6, %v664_v58  ;;  %v668_v1 = vsel %vm667_vm7, %v664_v58, %v666_v9  ;;  %v771_v44 = vpop.permute.xlu2 %770  ;;  %3911 = vst [vmem:[#allocation7_spill] sm:$0xff] %v3236_v52  ;;  %v3244_v58 = vperm.slane %v2720_v43, 2 }
  0xae   :  { %v686_v2 = vmul.f32 %v3201_v13, %v671_v3  ;;  %v684_v0 = vmul.f32 %v3203_v14, %v669_v23  ;;  %v685_v26 = vmul.f32 %v3207_v22, %v668_v1 }
  0xaf   :  { %3913 = vst [vmem:[#allocation9_spill] sm:$0xff] %v3244_v58 }
  0xb0   :  { %v692_v28 = vpack.c.bf16 %v686_v2, %v686_v2  ;;  %v690_v29 = vpack.c.bf16 %v684_v0, %v684_v0  ;;  %v691_v7 = vpack.c.bf16 %v685_v26, %v685_v26 }
  0xb2   :  { %v706_v38 = vsel %vm78_vm3, %v692_v28, 0  ;;  %v700_v39 = vsel %vm78_vm3, %v690_v29, 0  ;;  %v703_v40 = vsel %vm78_vm3, %v691_v7, 0 }
  0xb4   :  { %v765_v24 = vpop.permute.xlu0 %764  ;;  %v769_v46 = vpop.permute.xlu1 %768 }
  0xb5   :  { %v776_v56 = vsel %vm772_vm8, %v771_v44, %v765_v24  ;;  %v874_v7 = vpop.permute.xlu2 %873 }
  0xb6   :  { %2698 = vmatmul.msk.bf16.vlgmr.msrb.gmra.mxu0 %vm74_vm4, %v2697_v57  ;;  %2699 = vmatmul.msk.bf16.vlgmr.msrb.gmra.mxu1 %vm74_vm4, %v2697_v57 }
  0xb7   :  { %2700 = vmatmul.msk.bf16.vlgmr.msrb.gmra.mxu2 %vm74_vm4, %v2697_v57  ;;  %2701 = vmatmul.msk.bf16.vlgmr.msrb.gmra.mxu3 %vm74_vm4, %v2697_v57  ;;  %v3242_v57 = vperm.slane %v2720_v43, 1  ;;  %v3279_v43 = vperm.slane %v2726_v27, 2 }
  0xb8   :  { %610 = vmatpush.bf16.msrb.mxu0 %v592_v59  ;;  %649 = vmatpush.bf16.msrb.mxu3 %v601_v60  ;;  %v773_v59 = vsel %vm772_vm8, %v769_v46, %v771_v44 }
  0xb9   :  { %623 = vmatpush.bf16.msrb.mxu1 %v595_v61  ;;  %636 = vmatpush.bf16.msrb.mxu2 %v598_v62  ;;  %3912 = vst [vmem:[#allocation8_spill] sm:$0xff] %v3242_v57  ;;  %v791_v62 = vmul.f32 %v3236_v52, %v776_v56  ;;  %v790_v6 = vmul.f32 %v3244_v58, %v773_v59 }
  0xba   :  { %3917 = vst [vmem:[#allocation13_spill] sm:$0xff] %v3279_v43 }
  0xbb   :  { %v797_v3 = vpack.c.bf16 %v791_v62, %v791_v62  ;;  %v796_v1 = vpack.c.bf16 %v790_v6, %v790_v6  ;;  %v2715_v6 = vld [vmem:[%s3876_s2 + $0x18] sm:$0xf] }
  0xbc   :  { %v767_v45 = vpop.permute.xlu0 %766  ;;  %v870_v9 = vpop.permute.xlu1 %869 }
  0xbd   :  { %v775_v53 = vsel %vm772_vm8, %v765_v24, %v767_v45  ;;  %v774_v60 = vsel %vm772_vm8, %v767_v45, %v769_v46  ;;  %v811_v24 = vsel %vm78_vm3, %v797_v3, 0  ;;  %v808_v26 = vsel %vm78_vm3, %v796_v1, 0  ;;  %v2721_v1 = vld [vmem:[%s3876_s2 + $0x1c] sm:$0xf] }
  0xbe   :  { %v788_v61 = vmul.f32 %v3234_v47, %v775_v53  ;;  %v789_v5 = vmul.f32 %v3242_v57, %v774_v60 }
  0xc0   :  { %v794_v15 = vpack.c.bf16 %v788_v61, %v788_v61  ;;  %v795_v23 = vpack.c.bf16 %v789_v5, %v789_v5 }
  0xc2   :  { %v802_v2 = vsel %vm78_vm3, %v794_v15, 0  ;;  %v805_v0 = vsel %vm78_vm3, %v795_v23, 0 }
  0xc4   :  { %v876_v28 = vpop.permute.xlu0 %875  ;;  %v872_v29 = vpop.permute.xlu1 %871 }
  0xc5   :  { %v878_v44 = vsel %vm877_vm9, %v874_v7, %v876_v28  ;;  %v879_v45 = vsel %vm877_vm9, %v872_v29, %v874_v7 }
  0xc6   :  { %2705 = vmatmul.msk.bf16.vlgmr.msra.gmra.mxu1 %vm74_vm4, %v2703_v32  ;;  %2704 = vmatmul.msk.bf16.vlgmr.msra.gmra.mxu0 %vm74_vm4, %v2703_v32  ;;  %v895_v59 = vmul.f32 %v3279_v43, %v878_v44 }
  0xc7   :  { %2706 = vmatmul.msk.bf16.vlgmr.msra.gmra.mxu2 %vm74_vm4, %v2703_v32  ;;  %2707 = vmatmul.msk.bf16.vlgmr.msra.gmra.mxu3 %vm74_vm4, %v2703_v32  ;;  %v3269_v32 = vperm.slane %v2726_v27, 3 }
  0xc8   :  { %715 = vmatpush.bf16.msra.mxu0 %v697_v37  ;;  %754 = vmatpush.bf16.msra.mxu3 %v706_v38  ;;  %v3271_v37 = vperm.slane %v2726_v27, 0  ;;  %v881_v38 = vsel %vm877_vm9, %v876_v28, %v870_v9  ;;  %v901_v5 = vpack.c.bf16 %v895_v59, %v895_v59 }
  0xc9   :  { %728 = vmatpush.bf16.msra.mxu1 %v700_v39  ;;  %741 = vmatpush.bf16.msra.mxu2 %v703_v40  ;;  %3914 = vst [vmem:[#allocation10_spill] sm:$0xff] %v3269_v32  ;;  %v880_v39 = vsel %vm877_vm9, %v870_v9, %v872_v29  ;;  %v3277_v40 = vperm.slane %v2726_v27, 1  ;;  %v896_v46 = vmul.f32 %v3269_v32, %v881_v38  ;;  %v38_v29 = vpop.permute.xlu2 %37 }
  0xca   :  { %3915 = vst [vmem:[#allocation11_spill] sm:$0xff] %v3271_v37  ;;  %v893_v53 = vmul.f32 %v3271_v37, %v880_v39  ;;  %v913_v23 = vsel %vm78_vm3, %v901_v5, 0 }
  0xcb   :  { %3916 = vst [vmem:[#allocation12_spill] sm:$0xff] %v3277_v40  ;;  %v894_v56 = vmul.f32 %v3277_v40, %v879_v45  ;;  %v902_v60 = vpack.c.bf16 %v896_v46, %v896_v46 }
  0xcc   :  { %v899_v61 = vpack.c.bf16 %v893_v53, %v893_v53 }
  0xcd   :  { %v900_v62 = vpack.c.bf16 %v894_v56, %v894_v56  ;;  %v916_v15 = vsel %vm78_vm3, %v902_v60, 0 }
  0xce   :  { %v907_v9 = vsel %vm78_vm3, %v899_v61, 0 }
  0xcf   :  { %v910_v3 = vsel %vm78_vm3, %v900_v62, 0 }
  0xd6   :  { %2711 = vmatmul.msk.bf16.vlgmr.msrb.gmra.mxu1 %vm74_vm4, %v2709_v16  ;;  %2710 = vmatmul.msk.bf16.vlgmr.msrb.gmra.mxu0 %vm74_vm4, %v2709_v16 }
  0xd7   :  { %2712 = vmatmul.msk.bf16.vlgmr.msrb.gmra.mxu2 %vm74_vm4, %v2709_v16  ;;  %2713 = vmatmul.msk.bf16.vlgmr.msrb.gmra.mxu3 %vm74_vm4, %v2709_v16 }
  0xd8   :  { %820 = vmatpush.bf16.msrb.mxu0 %v802_v2  ;;  %859 = vmatpush.bf16.msrb.mxu3 %v811_v24  ;;  %v2727_v24 = vld [vmem:[%s3876_s2 + $0x20] sm:$0xf] }
  0xd9   :  { %833 = vmatpush.bf16.msrb.mxu1 %v805_v0  ;;  %846 = vmatpush.bf16.msrb.mxu2 %v808_v26 }
  0xe6   :  { %2717 = vmatmul.msk.bf16.vlgmr.msra.gmra.mxu1 %vm74_vm4, %v2715_v6  ;;  %2716 = vmatmul.msk.bf16.vlgmr.msra.gmra.mxu0 %vm74_vm4, %v2715_v6 }
  0xe7   :  { %2718 = vmatmul.msk.bf16.vlgmr.msra.gmra.mxu2 %vm74_vm4, %v2715_v6  ;;  %2719 = vmatmul.msk.bf16.vlgmr.msra.gmra.mxu3 %vm74_vm4, %v2715_v6 }
  0xe8   :  { %925 = vmatpush.bf16.msra.mxu0 %v907_v9  ;;  %964 = vmatpush.bf16.msra.mxu3 %v916_v15 }
  0xe9   :  { %938 = vmatpush.bf16.msra.mxu1 %v910_v3  ;;  %951 = vmatpush.bf16.msra.mxu2 %v913_v23 }
  0xf6   :  { %2723 = vmatmul.msk.bf16.vlgmr.msrb.gmra.mxu1 %vm74_vm4, %v2721_v1  ;;  %2722 = vmatmul.msk.bf16.vlgmr.msrb.gmra.mxu0 %vm74_vm4, %v2721_v1 }
  0xf7   :  { %2724 = vmatmul.msk.bf16.vlgmr.msrb.gmra.mxu2 %vm74_vm4, %v2721_v1  ;;  %2725 = vmatmul.msk.bf16.vlgmr.msrb.gmra.mxu3 %vm74_vm4, %v2721_v1 }
 0x103   :  { %v100_v16 = vpop.f32.mrf.mxu0  ;;  %v113_v2 = vpop.f32.mrf.mxu1 }
 0x104   :  { %v143_v39 = vadd.f32 %v100_v16, %v38_v29  ;;  %v144_v44 = vadd.f32 %v113_v2, %v38_v29 }
 0x106   :  { %2728 = vmatmul.msk.bf16.vlgmr.msra.gmra.mxu0 %vm74_vm4, %v2727_v24  ;;  %2729 = vmatmul.msk.bf16.vlgmr.msra.gmra.mxu1 %vm74_vm4, %v2727_v24 }
 0x107   :  { %2730 = vmatmul.msk.bf16.vlgmr.msra.gmra.mxu2 %vm74_vm4, %v2727_v24  ;;  %2731 = vmatmul.msk.bf16.vlgmr.msra.gmra.mxu3 %vm74_vm4, %v2727_v24 }
 0x10a   :  { %v126_v0 = vpop.f32.mrf.mxu2  ;;  %v139_v26 = vpop.f32.mrf.mxu3 }
 0x10b   :  { %v102_v27 = vpop.f32.mrf.mxu0  ;;  %v115_v28 = vpop.f32.mrf.mxu1  ;;  %v146_v59 = vadd.f32 %v139_v26, %v38_v29  ;;  %v145_v60 = vadd.f32 %v126_v0, %v38_v29 }
 0x112   :  { %v128_v7 = vpop.f32.mrf.mxu2  ;;  %v141_v38 = vpop.f32.mrf.mxu3 }
 0x113   :  { %v205_v45 = vpop.f32.mrf.mxu0  ;;  %v218_v46 = vpop.f32.mrf.mxu1 }
 0x114   :  { %v248_v53 = vadd.f32 %v205_v45, %v143_v39  ;;  %v249_v56 = vadd.f32 %v218_v46, %v144_v44 }
 0x11a   :  { %v231_v61 = vpop.f32.mrf.mxu2  ;;  %v244_v62 = vpop.f32.mrf.mxu3 }
 0x11b   :  { %v250_v5 = vadd.f32 %v231_v61, %v145_v60  ;;  %v251_v6 = vadd.f32 %v244_v62, %v146_v59  ;;  %v207_v9 = vpop.f32.mrf.mxu0  ;;  %v220_v15 = vpop.f32.mrf.mxu1 }
 0x122   :  { %v233_v3 = vpop.f32.mrf.mxu2  ;;  %v246_v23 = vpop.f32.mrf.mxu3 }
 0x123   :  { %v310_v1 = vpop.f32.mrf.mxu0  ;;  %v323_v24 = vpop.f32.mrf.mxu1 }
 0x124   :  { %v353_v27 = vadd.f32 %v310_v1, %v248_v53  ;;  %v354_v28 = vadd.f32 %v323_v24, %v249_v56 }
 0x12a   :  { %v336_v16 = vpop.f32.mrf.mxu2  ;;  %v349_v2 = vpop.f32.mrf.mxu3 }
 0x12b   :  { %v355_v7 = vadd.f32 %v336_v16, %v250_v5  ;;  %v356_v38 = vadd.f32 %v349_v2, %v251_v6  ;;  %v312_v39 = vpop.f32.mrf.mxu0  ;;  %v325_v44 = vpop.f32.mrf.mxu1 }
 0x132   :  { %v338_v26 = vpop.f32.mrf.mxu2  ;;  %v351_v0 = vpop.f32.mrf.mxu3 }
 0x133   :  { %v415_v29 = vpop.f32.mrf.mxu0  ;;  %v428_v45 = vpop.f32.mrf.mxu1 }
 0x134   :  { %v458_v46 = vadd.f32 %v415_v29, %v353_v27  ;;  %v459_v59 = vadd.f32 %v428_v45, %v354_v28 }
 0x13a   :  { %v441_v60 = vpop.f32.mrf.mxu2  ;;  %v454_v61 = vpop.f32.mrf.mxu3 }
 0x13b   :  { %v460_v62 = vadd.f32 %v441_v60, %v355_v7  ;;  %v461_v9 = vadd.f32 %v454_v61, %v356_v38  ;;  %v417_v15 = vpop.f32.mrf.mxu0  ;;  %v430_v3 = vpop.f32.mrf.mxu1 }
 0x142   :  { %v443_v53 = vpop.f32.mrf.mxu2  ;;  %v456_v56 = vpop.f32.mrf.mxu3 }
 0x143   :  { %v507_v23 = vpop.f32.mrf.mxu0  ;;  %v520_v1 = vpop.f32.mrf.mxu1 }
 0x144   :  { %v550_v5 = vadd.f32 %v507_v23, %v458_v46  ;;  %v551_v32 = vadd.f32 %v520_v1, %v459_v59 }
 0x14a   :  { %v533_v6 = vpop.f32.mrf.mxu2  ;;  %v546_v24 = vpop.f32.mrf.mxu3 }
 0x14b   :  { %v509_v16 = vpop.f32.mrf.mxu0  ;;  %v522_v2 = vpop.f32.mrf.mxu1  ;;  %v552_v57 = vadd.f32 %v533_v6, %v460_v62  ;;  %v553_v47 = vadd.f32 %v546_v24, %v461_v9 }
 0x152   :  { %v535_v39 = vpop.f32.mrf.mxu2  ;;  %v548_v44 = vpop.f32.mrf.mxu3 }
 0x153   :  { %v612_v26 = vpop.f32.mrf.mxu0  ;;  %v625_v27 = vpop.f32.mrf.mxu1 }
 0x154   :  { %v656_v43 = vadd.f32 %v625_v27, %v551_v32 }
 0x15a   :  { %v638_v28 = vpop.f32.mrf.mxu2  ;;  %v651_v0 = vpop.f32.mrf.mxu3 }
 0x15b   :  { %v614_v29 = vpop.f32.mrf.mxu0  ;;  %v627_v7 = vpop.f32.mrf.mxu1 }
 0x162   :  { %v640_v38 = vpop.f32.mrf.mxu2  ;;  %v653_v45 = vpop.f32.mrf.mxu3 }
 0x163   :  { %v717_v60 = vpop.f32.mrf.mxu0  ;;  %v730_v61 = vpop.f32.mrf.mxu1 }
 0x164   :  { %v761_v29 = vadd.f32 %v730_v61, %v656_v43 }
 0x16a   :  { %v743_v15 = vpop.f32.mrf.mxu2  ;;  %v756_v3 = vpop.f32.mrf.mxu3 }
 0x16b   :  { %v719_v53 = vpop.f32.mrf.mxu0  ;;  %v732_v46 = vpop.f32.mrf.mxu1 }
 0x16c   :  { %v655_v53 = vadd.f32 %v612_v26, %v550_v5 }
 0x16e   :  { %v760_v14 = vadd.f32 %v717_v60, %v655_v53 }
 0x172   :  { %v745_v56 = vpop.f32.mrf.mxu2  ;;  %v758_v23 = vpop.f32.mrf.mxu3 }
 0x173   :  { %v822_v16 = vpop.f32.mrf.mxu0  ;;  %v835_v2 = vpop.f32.mrf.mxu1  ;;  %v657_v56 = vadd.f32 %v638_v28, %v552_v57  ;;  %v658_v23 = vadd.f32 %v651_v0, %v553_v47 }
 0x174   :  { %v866_v7 = vadd.f32 %v835_v2, %v761_v29 }
 0x175   :  { %v762_v13 = vadd.f32 %v743_v15, %v657_v56 }
 0x17a   :  { %v848_v39 = vpop.f32.mrf.mxu2  ;;  %v861_v44 = vpop.f32.mrf.mxu3 }
 0x17b   :  { %v824_v40 = vpop.f32.mrf.mxu0  ;;  %v837_v37 = vpop.f32.mrf.mxu1  ;;  %v867_v32 = vadd.f32 %v848_v39, %v762_v13 }
 0x17c   :  { %v763_v40 = vadd.f32 %v756_v3, %v658_v23  ;;  %v865_v37 = vadd.f32 %v822_v16, %v760_v14 }
 0x17e   :  { %v868_v43 = vadd.f32 %v861_v44, %v763_v40 }
 0x182   :  { %v850_v38 = vpop.f32.mrf.mxu2  ;;  %v863_v45 = vpop.f32.mrf.mxu3 }
 0x183   :  { %v927_v58 = vpop.f32.mrf.mxu0  ;;  %v940_v52 = vpop.f32.mrf.mxu1 }
 0x184   :  { %v971_v46 = vadd.f32 %v940_v52, %v866_v7  ;;  %v970_v59 = vadd.f32 %v927_v58, %v865_v37  ;;  %v978_v58 = vld [vmem:[%s3878_s5] sm:$0xff] }
 0x185   :  { %v1000_v37 = vld [vmem:[%s3879_s4] sm:$0xf] }
 0x186   :  { %v3314_v10 = vmax.f32 %v971_v46, 0.0  ;;  %v3322_v24 = vmax.f32 %v970_v59, 0.0 }
 0x188   :  { %986 = vrot.lane.b32.xlu0 %v3314_v10, %s2847_s9 }
 0x18a   :  { %v953_v62 = vpop.f32.mrf.mxu2  ;;  %v966_v9 = vpop.f32.mrf.mxu3 }
 0x18b   :  { %v972_v1 = vadd.f32 %v953_v62, %v867_v32  ;;  %v973_v6 = vadd.f32 %v966_v9, %v868_v43  ;;  %v942_v5 = vpop.f32.mrf.mxu1  ;;  %v929_v52 = vpop.f32.mrf.mxu0 }
 0x18d   :  { %v3318_v57 = vmax.f32 %v972_v1, 0.0  ;;  %v3320_v47 = vmax.f32 %v973_v6, 0.0 }
 0x18f   :  { %988 = vrot.lane.b32.xlu1 %v3318_v57, %s2847_s9  ;;  %990 = vrot.lane.b32.xlu2 %v3320_v47, %s2847_s9 }
 0x190   :  { %984 = vrot.lane.b32.xlu0 %v3322_v24, %s2847_s9 }
 0x192   :  { %v955_v13 = vpop.f32.mrf.mxu2  ;;  %v968_v14 = vpop.f32.mrf.mxu3 }
 0x197   :  { %1080 = vrot.lane.b32.xlu2 %v3318_v57, %s2848_s10  ;;  %1078 = vrot.lane.b32.xlu1 %v3314_v10, %s2848_s10 }
 0x198   :  { %1082 = vrot.lane.b32.xlu0 %v3320_v47, %s2848_s10 }
 0x19f   :  { %1171 = vrot.lane.b32.xlu2 %v3314_v10, %s2849_s15  ;;  %1076 = vrot.lane.b32.xlu1 %v3322_v24, %s2848_s10 }
 0x1a0   :  { %1173 = vrot.lane.b32.xlu0 %v3318_v57, %s2849_s15 }
 0x1a7   :  { %1169 = vrot.lane.b32.xlu2 %v3322_v24, %s2849_s15  ;;  %1175 = vrot.lane.b32.xlu1 %v3320_v47, %s2849_s15 }
 0x1a8   :  { %1264 = vrot.lane.b32.xlu0 %v3314_v10, %s2850_s0 }
 0x1af   :  { %1268 = vrot.lane.b32.xlu2 %v3320_v47, %s2850_s0  ;;  %1266 = vrot.lane.b32.xlu1 %v3318_v57, %s2850_s0 }
 0x1b0   :  { %1262 = vrot.lane.b32.xlu0 %v3322_v24, %s2850_s0 }
 0x1b7   :  { %1440 = vrot.lane.b32.xlu2 %v3318_v57, %s2851_s16  ;;  %1436 = vrot.lane.b32.xlu1 %v3322_v24, %s2851_s16 }
 0x1b8   :  { %1442 = vrot.lane.b32.xlu0 %v3320_v47, %s2851_s16 }
 0x1bf   :  { %1529 = vrot.lane.b32.xlu2 %v3322_v24, %s2852_s17  ;;  %1438 = vrot.lane.b32.xlu1 %v3314_v10, %s2851_s16 }
 0x1c0   :  { %1533 = vrot.lane.b32.xlu0 %v3318_v57, %s2852_s17 }
 0x1c7   :  { %1531 = vrot.lane.b32.xlu2 %v3314_v10, %s2852_s17  ;;  %1535 = vrot.lane.b32.xlu1 %v3320_v47, %s2852_s17 }
 0x1c8   :  { %1622 = vrot.lane.b32.xlu0 %v3322_v24, %s2853_s18 }
 0x1cf   :  { %1628 = vrot.lane.b32.xlu2 %v3320_v47, %s2853_s18  ;;  %1626 = vrot.lane.b32.xlu1 %v3318_v57, %s2853_s18 }
 0x1d0   :  { %1624 = vrot.lane.b32.xlu0 %v3314_v10, %s2853_s18 }
 0x1d7   :  { %1719 = vrot.lane.b32.xlu2 %v3318_v57, %s2854_s19  ;;  %1715 = vrot.lane.b32.xlu1 %v3322_v24, %s2854_s19 }
 0x1d8   :  { %1721 = vrot.lane.b32.xlu0 %v3320_v47, %s2854_s19 }
 0x1df   :  { %981 = vperm.xlu2 %2829, %v978_v58   ;;  %1717 = vrot.lane.b32.xlu1 %v3314_v10, %s2854_s19 }
 0x1e9   :  { %v991_v26 = vpop.permute.xlu2 %990 }
 0x1f1   :  { %v1081_v27 = vpop.permute.xlu2 %1080 }
 0x1f9   :  { %v1172_v0 = vpop.permute.xlu2 %1171 }
 0x1fa   :  { %v987_v28 = vpop.permute.xlu0 %986 }
 0x201   :  { %v989_v60 = vpop.permute.xlu1 %988  ;;  %v1170_v59 = vpop.permute.xlu2 %1169 }
 0x202   :  { %v992_v61 = vsel %vm50_vm1, %v989_v60, %v991_v26  ;;  %v993_v15 = vsel %vm50_vm1, %v987_v28, %v989_v60  ;;  %v985_v3 = vpop.permute.xlu0 %984  ;;  %v1179_v52 = vsel %vm260_vm2, %v1170_v59, %v1172_v0 }
 0x203   :  { %v998_v16 = vmul.f32 %v993_v15, %v3014_v20  ;;  %v999_v2 = vmul.f32 %v992_v61, %v3016_v21  ;;  %v994_v39 = vsel %vm50_vm1, %v985_v3, %v987_v28  ;;  %v995_v44 = vsel %vm50_vm1, %v991_v26, %v985_v3 }
 0x204   :  { %v997_v29 = vmul.f32 %v994_v39, %v3012_v19  ;;  %v996_v45 = vmul.f32 %v995_v44, %v3010_v18  ;;  %v1182_v26 = vmul.f32 %v1179_v52, %v3019_v25 }
 0x205   :  { %v1003_v7 = vpack.c.bf16 %v998_v16, %v998_v16  ;;  %v1004_v38 = vpack.c.bf16 %v999_v2, %v999_v2 }
 0x206   :  { %v1002_v53 = vpack.c.bf16 %v997_v29, %v997_v29  ;;  %v1001_v46 = vpack.c.bf16 %v996_v45, %v996_v45  ;;  %v1188_v39 = vpack.c.bf16 %v1182_v26, %v1182_v26  ;;  %v1357_v26 = vmul.f32 %v3318_v57, %v3129_v54 }
 0x207   :  { %v1015_v56 = vsel %vm78_vm3, %v1003_v7, 0  ;;  %v1018_v23 = vsel %vm78_vm3, %v1004_v38, 0 }
 0x208   :  { %1053 = vmatpush.bf16.msrb.mxu2 %v1015_v56  ;;  %1066 = vmatpush.bf16.msrb.mxu3 %v1018_v23  ;;  %v1012_v40 = vsel %vm78_vm3, %v1002_v53, 0  ;;  %v1009_v43 = vsel %vm78_vm3, %v1001_v46, 0  ;;  %v1198_v46 = vsel %vm78_vm3, %v1188_v39, 0 }
 0x209   :  { %v1079_v32 = vpop.permute.xlu1 %1078  ;;  %1040 = vmatpush.bf16.msrb.mxu1 %v1012_v40  ;;  %1027 = vmatpush.bf16.msrb.mxu0 %v1009_v43 }
 0x20a   :  { %v1085_v62 = vsel %vm155_vm0, %v1079_v32, %v1081_v27  ;;  %v1083_v9 = vpop.permute.xlu0 %1082 }
 0x20b   :  { %v1090_v1 = vmul.f32 %v1085_v62, %v2993_v12  ;;  %2734 = vmatmul.msk.bf16.vlgmr.msrb.gmra.mxu2 %vm74_vm4, %v1000_v37  ;;  %2735 = vmatmul.msk.bf16.vlgmr.msrb.gmra.mxu3 %vm74_vm4, %v1000_v37  ;;  %v1084_v6 = vsel %vm155_vm0, %v1081_v27, %v1083_v9 }
 0x20c   :  { %v1091_v5 = vmul.f32 %v1084_v6, %v3042_v42  ;;  %2733 = vmatmul.msk.bf16.vlgmr.msrb.gmra.mxu1 %vm74_vm4, %v1000_v37  ;;  %2732 = vmatmul.msk.bf16.vlgmr.msrb.gmra.mxu0 %vm74_vm4, %v1000_v37 }
 0x20d   :  { %v1096_v13 = vpack.c.bf16 %v1090_v1, %v1090_v1 }
 0x20e   :  { %v1097_v14 = vpack.c.bf16 %v1091_v5, %v1091_v5 }
 0x20f   :  { %v1108_v58 = vsel %vm78_vm3, %v1096_v13, 0 }
 0x210   :  { %1146 = vmatpush.bf16.msra.mxu2 %v1108_v58  ;;  %v1111_v28 = vsel %vm78_vm3, %v1097_v14, 0 }
 0x211   :  { %v1077_v60 = vpop.permute.xlu1 %1076  ;;  %1159 = vmatpush.bf16.msra.mxu3 %v1111_v28 }
 0x212   :  { %v1086_v27 = vsel %vm155_vm0, %v1077_v60, %v1079_v32  ;;  %v1087_v61 = vsel %vm155_vm0, %v1083_v9, %v1077_v60  ;;  %v1174_v15 = vpop.permute.xlu0 %1173 }
 0x213   :  { %v1088_v3 = vmul.f32 %v1087_v61, %v3040_v41  ;;  %v1089_v16 = vmul.f32 %v1086_v27, %v3037_v35  ;;  %v1178_v2 = vsel %vm260_vm2, %v1172_v0, %v1174_v15  ;;  %v2736_v0 = vld [vmem:[%s3879_s4 + $0x4] sm:$0xf]  ;;  %v1358_v61 = vmul.f32 %v3320_v47, %v3131_v55 }
 0x214   :  { %v1183_v44 = vmul.f32 %v1178_v2, %v3069_v63 }
 0x215   :  { %v1094_v29 = vpack.c.bf16 %v1088_v3, %v1088_v3  ;;  %v1095_v7 = vpack.c.bf16 %v1089_v16, %v1089_v16  ;;  %v1355_v16 = vmul.f32 %v3322_v24, %v3123_v50  ;;  %v2741_v24 = vld [vmem:[%s3879_s4 + $0x8] sm:$0xf] }
 0x216   :  { %v1189_v38 = vpack.c.bf16 %v1183_v44, %v1183_v44  ;;  %v1356_v44 = vmul.f32 %v3314_v10, %v3125_v51 }
 0x217   :  { %v1102_v45 = vsel %vm78_vm3, %v1094_v29, 0  ;;  %v1105_v53 = vsel %vm78_vm3, %v1095_v7, 0  ;;  %v1363_v7 = vpack.c.bf16 %v1357_v26, %v1357_v26  ;;  %v1361_v10 = vpack.c.bf16 %v1355_v16, %v1355_v16 }
 0x218   :  { %1120 = vmatpush.bf16.msra.mxu0 %v1102_v45  ;;  %1133 = vmatpush.bf16.msra.mxu1 %v1105_v53  ;;  %v1201_v56 = vsel %vm78_vm3, %v1189_v38, 0  ;;  %v1364_v53 = vpack.c.bf16 %v1358_v61, %v1358_v61  ;;  %v2746_v61 = vld [vmem:[%s3879_s4 + $0xc] sm:$0xf] }
 0x219   :  { %v1176_v23 = vpop.permute.xlu1 %1175  ;;  %1239 = vmatpush.bf16.msrb.mxu2 %v1201_v56 }
 0x21a   :  { %v1177_v40 = vsel %vm260_vm2, %v1174_v15, %v1176_v23  ;;  %v1180_v37 = vsel %vm260_vm2, %v1176_v23, %v1170_v59  ;;  %v1265_v32 = vpop.permute.xlu0 %1264  ;;  %v1269_v59 = vpop.permute.xlu2 %1268  ;;  %v1362_v23 = vpack.c.bf16 %v1356_v44, %v1356_v44 }
 0x21b   :  { %v1181_v43 = vmul.f32 %v1180_v37, %v3072_v4  ;;  %v1184_v62 = vmul.f32 %v1177_v40, %v3079_v11  ;;  %2739 = vmatmul.msk.bf16.vlgmr.msra.gmra.mxu2 %vm74_vm4, %v2736_v0  ;;  %2740 = vmatmul.msk.bf16.vlgmr.msra.gmra.mxu3 %vm74_vm4, %v2736_v0  ;;  %v1375_v37 = vsel %vm78_vm3, %v1363_v7, 0 }
 0x21c   :  { %1226 = vmatpush.bf16.msrb.mxu1 %v1198_v46  ;;  %2737 = vmatmul.msk.bf16.vlgmr.msra.gmra.mxu0 %vm74_vm4, %v2736_v0 }
 0x21d   :  { %2738 = vmatmul.msk.bf16.vlgmr.msra.gmra.mxu1 %vm74_vm4, %v2736_v0  ;;  %v1187_v9 = vpack.c.bf16 %v1181_v43, %v1181_v43  ;;  %v1190_v1 = vpack.c.bf16 %v1184_v62, %v1184_v62  ;;  %v1369_v62 = vsel %vm78_vm3, %v1361_v10, 0 }
 0x21f   :  { %v1195_v6 = vsel %vm78_vm3, %v1187_v9, 0  ;;  %v1204_v5 = vsel %vm78_vm3, %v1190_v1, 0  ;;  %v1372_v9 = vsel %vm78_vm3, %v1362_v23, 0  ;;  %v3920_v23 = vld [vmem:[#allocation4_spill] sm:$0xff] }
 0x220   :  { %1213 = vmatpush.bf16.msrb.mxu0 %v1195_v6  ;;  %1252 = vmatpush.bf16.msrb.mxu3 %v1204_v5 }
 0x221   :  { %v1267_v52 = vpop.permute.xlu1 %1266 }
 0x222   :  { %v1270_v13 = vsel %vm365_vm5, %v1267_v52, %v1269_v59  ;;  %v1271_v14 = vsel %vm365_vm5, %v1265_v32, %v1267_v52  ;;  %v1263_v58 = vpop.permute.xlu0 %1262  ;;  %v1441_v40 = vpop.permute.xlu2 %1440 }
 0x223   :  { %v1276_v28 = vmul.f32 %v1271_v14, %v3096_v30  ;;  %v1277_v60 = vmul.f32 %v1270_v13, %v3101_v33  ;;  %v1272_v27 = vsel %vm365_vm5, %v1263_v58, %v1265_v32  ;;  %v1273_v15 = vsel %vm365_vm5, %v1269_v59, %v1263_v58 }
 0x224   :  { %v1275_v3 = vmul.f32 %v1272_v27, %v3119_v48  ;;  %v1274_v39 = vmul.f32 %v1273_v15, %v3121_v49  ;;  %v1378_v32 = vsel %vm78_vm3, %v1364_v53, 0 }
 0x225   :  { %v1282_v2 = vpack.c.bf16 %v1276_v28, %v1276_v28  ;;  %v1283_v57 = vpack.c.bf16 %v1277_v60, %v1277_v60 }
 0x226   :  { %v1281_v29 = vpack.c.bf16 %v1275_v3, %v1275_v3  ;;  %v1280_v38 = vpack.c.bf16 %v1274_v39, %v1274_v39 }
 0x227   :  { %v1294_v47 = vsel %vm78_vm3, %v1282_v2, 0  ;;  %v1297_v45 = vsel %vm78_vm3, %v1283_v57, 0 }
 0x228   :  { %1332 = vmatpush.bf16.msra.mxu2 %v1294_v47  ;;  %1345 = vmatpush.bf16.msra.mxu3 %v1297_v45  ;;  %v1291_v46 = vsel %vm78_vm3, %v1281_v29, 0  ;;  %v1288_v0 = vsel %vm78_vm3, %v1280_v38, 0 }
 0x229   :  { %v1437_v56 = vpop.permute.xlu1 %1436  ;;  %1319 = vmatpush.bf16.msra.mxu1 %v1291_v46  ;;  %1306 = vmatpush.bf16.msra.mxu0 %v1288_v0  ;;  %v3919_v0 = vld [vmem:[#allocation2_spill] sm:$0xff] }
 0x22a   :  { %v1443_v43 = vpop.permute.xlu0 %1442  ;;  %v1530_v58 = vpop.permute.xlu2 %1529 }
 0x22b   :  { %2744 = vmatmul.msk.bf16.vlgmr.msrb.gmra.mxu2 %vm74_vm4, %v2741_v24  ;;  %2745 = vmatmul.msk.bf16.vlgmr.msrb.gmra.mxu3 %vm74_vm4, %v2741_v24  ;;  %v1444_v1 = vsel %vm562_vm6, %v1441_v40, %v1443_v43  ;;  %v1447_v6 = vsel %vm562_vm6, %v1443_v43, %v1437_v56 }
 0x22c   :  { %1413 = vmatpush.bf16.msrb.mxu2 %v1375_v37  ;;  %1426 = vmatpush.bf16.msrb.mxu3 %v1378_v32  ;;  %v1450_v13 = vmul.f32 %v1444_v1, %v3170_v34  ;;  %v1451_v14 = vmul.f32 %v1447_v6, %v3164_v31 }
 0x22d   :  { %2742 = vmatmul.msk.bf16.vlgmr.msrb.gmra.mxu0 %vm74_vm4, %v2741_v24  ;;  %2743 = vmatmul.msk.bf16.vlgmr.msrb.gmra.mxu1 %vm74_vm4, %v2741_v24  ;;  %v3918_v24 = vld [vmem:[#allocation3_spill] sm:$0xff] }
 0x22e   :  { %1387 = vmatpush.bf16.msrb.mxu0 %v1369_v62  ;;  %1400 = vmatpush.bf16.msrb.mxu1 %v1372_v9  ;;  %v1456_v60 = vpack.c.bf16 %v1450_v13, %v1450_v13  ;;  %v1457_v27 = vpack.c.bf16 %v1451_v14, %v1451_v14  ;;  %v2751_v62 = vld [vmem:[%s3879_s4 + $0x10] sm:$0xf] }
 0x230   :  { %v1468_v2 = vsel %vm78_vm3, %v1456_v60, 0  ;;  %v1471_v57 = vsel %vm78_vm3, %v1457_v27, 0 }
 0x231   :  { %v1439_v5 = vpop.permute.xlu1 %1438 }
 0x232   :  { %v1445_v59 = vsel %vm562_vm6, %v1439_v5, %v1441_v40  ;;  %v1446_v52 = vsel %vm562_vm6, %v1437_v56, %v1439_v5  ;;  %v1534_v16 = vpop.permute.xlu0 %1533  ;;  %v1532_v7 = vpop.permute.xlu2 %1531 }
 0x233   :  { %v1448_v26 = vmul.f32 %v1446_v52, %v3166_v17  ;;  %v1449_v28 = vmul.f32 %v1445_v59, %v3172_v36  ;;  %v1539_v45 = vsel %vm667_vm7, %v1530_v58, %v1532_v7  ;;  %v1538_v53 = vsel %vm667_vm7, %v1532_v7, %v1534_v16 }
 0x234   :  { %v1541_v10 = vmul.f32 %v1539_v45, %v3919_v0  ;;  %v1542_v40 = vmul.f32 %v1538_v53, %v3920_v23 }
 0x235   :  { %v1454_v15 = vpack.c.bf16 %v1448_v26, %v1448_v26  ;;  %v1455_v3 = vpack.c.bf16 %v1449_v28, %v1449_v28 }
 0x236   :  { %v1547_v9 = vpack.c.bf16 %v1541_v10, %v1541_v10  ;;  %v1548_v1 = vpack.c.bf16 %v1542_v40, %v1542_v40 }
 0x237   :  { %v1462_v44 = vsel %vm78_vm3, %v1454_v15, 0  ;;  %v1465_v29 = vsel %vm78_vm3, %v1455_v3, 0  ;;  %v3922_v3 = vld [vmem:[#allocation9_spill] sm:$0xff] }
 0x238   :  { %v1555_v52 = vsel %vm78_vm3, %v1547_v9, 0  ;;  %v1558_v13 = vsel %vm78_vm3, %v1548_v1, 0 }
 0x239   :  { %v1536_v39 = vpop.permute.xlu1 %1535 }
 0x23a   :  { %v1537_v38 = vsel %vm667_vm7, %v1534_v16, %v1536_v39  ;;  %v1540_v47 = vsel %vm667_vm7, %v1536_v39, %v1530_v58  ;;  %v1623_v37 = vpop.permute.xlu0 %1622  ;;  %v1629_v14 = vpop.permute.xlu2 %1628  ;;  %v3924_v39 = vld [vmem:[#allocation8_spill] sm:$0xff] }
 0x23b   :  { %2749 = vmatmul.msk.bf16.vlgmr.msra.gmra.mxu2 %vm74_vm4, %v2746_v61  ;;  %2750 = vmatmul.msk.bf16.vlgmr.msra.gmra.mxu3 %vm74_vm4, %v2746_v61  ;;  %v1543_v46 = vmul.f32 %v1537_v38, %v3207_v22  ;;  %v1544_v56 = vmul.f32 %v1540_v47, %v3918_v24  ;;  %v1633_v26 = vsel %vm772_vm8, %v1629_v14, %v1623_v37  ;;  %v2756_v47 = vld [vmem:[%s3879_s4 + $0x14] sm:$0xf] }
 0x23c   :  { %1506 = vmatpush.bf16.msra.mxu2 %v1468_v2  ;;  %1519 = vmatpush.bf16.msra.mxu3 %v1471_v57  ;;  %v3923_v2 = vld [vmem:[#allocation6_spill] sm:$0xff] }
 0x23d   :  { %2747 = vmatmul.msk.bf16.vlgmr.msra.gmra.mxu0 %vm74_vm4, %v2746_v61  ;;  %2748 = vmatmul.msk.bf16.vlgmr.msra.gmra.mxu1 %vm74_vm4, %v2746_v61  ;;  %v1549_v32 = vpack.c.bf16 %v1543_v46, %v1543_v46  ;;  %v1550_v43 = vpack.c.bf16 %v1544_v56, %v1544_v56  ;;  %v3921_v61 = vld [vmem:[#allocation7_spill] sm:$0xff] }
 0x23e   :  { %1480 = vmatpush.bf16.msra.mxu0 %v1462_v44  ;;  %1493 = vmatpush.bf16.msra.mxu1 %v1465_v29  ;;  %v1637_v15 = vmul.f32 %v1633_v26, %v3921_v61  ;;  %v3928_v26 = vld [vmem:[#allocation12_spill] sm:$0xff] }
 0x23f   :  { %v1561_v5 = vsel %vm78_vm3, %v1549_v32, 0  ;;  %v1564_v59 = vsel %vm78_vm3, %v1550_v43, 0 }
 0x240   :  { %v1643_v7 = vpack.c.bf16 %v1637_v15, %v1637_v15  ;;  %v2761_v15 = vld [vmem:[%s3879_s4 + $0x18] sm:$0xf] }
 0x241   :  { %v1627_v6 = vpop.permute.xlu1 %1626 }
 0x242   :  { %v1625_v58 = vpop.permute.xlu0 %1624  ;;  %v1630_v28 = vsel %vm772_vm8, %v1627_v6, %v1629_v14  ;;  %v1657_v56 = vsel %vm78_vm3, %v1643_v7, 0  ;;  %v1720_v32 = vpop.permute.xlu2 %1719  ;;  %v3927_v14 = vld [vmem:[#allocation11_spill] sm:$0xff] }
 0x243   :  { %v1631_v60 = vsel %vm772_vm8, %v1625_v58, %v1627_v6  ;;  %v1632_v27 = vsel %vm772_vm8, %v1623_v37, %v1625_v58  ;;  %v1636_v16 = vmul.f32 %v1630_v28, %v3922_v3 }
 0x244   :  { %v1634_v57 = vmul.f32 %v1632_v27, %v3923_v2  ;;  %v1635_v44 = vmul.f32 %v1631_v60, %v3924_v39 }
 0x245   :  { %v1642_v38 = vpack.c.bf16 %v1636_v16, %v1636_v16 }
 0x246   :  { %v1640_v45 = vpack.c.bf16 %v1634_v57, %v1634_v57  ;;  %v1641_v53 = vpack.c.bf16 %v1635_v44, %v1635_v44 }
 0x247   :  { %v1654_v46 = vsel %vm78_vm3, %v1642_v38, 0 }
 0x248   :  { %v1648_v40 = vsel %vm78_vm3, %v1640_v45, 0  ;;  %v1651_v37 = vsel %vm78_vm3, %v1641_v53, 0  ;;  %v2771_v45 = vld [vmem:[%s3879_s4 + $0x20] sm:$0xf] }
 0x249   :  { %v1716_v29 = vpop.permute.xlu1 %1715 }
 0x24a   :  { %v1722_v10 = vpop.permute.xlu0 %1721 }
 0x24b   :  { %2754 = vmatmul.msk.bf16.vlgmr.msrb.gmra.mxu2 %vm74_vm4, %v2751_v62  ;;  %2755 = vmatmul.msk.bf16.vlgmr.msrb.gmra.mxu3 %vm74_vm4, %v2751_v62  ;;  %v1726_v9 = vsel %vm877_vm9, %v1722_v10, %v1716_v29 }
 0x24c   :  { %1599 = vmatpush.bf16.msrb.mxu2 %v1561_v5  ;;  %1612 = vmatpush.bf16.msrb.mxu3 %v1564_v59  ;;  %v3925_v5 = vld [vmem:[#allocation13_spill] sm:$0xff] }
 0x24d   :  { %2752 = vmatmul.msk.bf16.vlgmr.msrb.gmra.mxu0 %vm74_vm4, %v2751_v62  ;;  %2753 = vmatmul.msk.bf16.vlgmr.msrb.gmra.mxu1 %vm74_vm4, %v2751_v62  ;;  %v1723_v62 = vsel %vm877_vm9, %v1720_v32, %v1722_v10 }
 0x24e   :  { %1573 = vmatpush.bf16.msrb.mxu0 %v1555_v52  ;;  %1586 = vmatpush.bf16.msrb.mxu1 %v1558_v13  ;;  %v1729_v59 = vmul.f32 %v1723_v62, %v3925_v5  ;;  %v3926_v52 = vld [vmem:[#allocation10_spill] sm:$0xff]  ;;  %v982_v62 = vpop.permute.xlu2 %981 }
 0x24f   :  { %v1730_v13 = vmul.f32 %v1726_v9, %v3926_v52 }
 0x250   :  { %v1735_v60 = vpack.c.bf16 %v1729_v59, %v1729_v59 }
 0x251   :  { %v1718_v43 = vpop.permute.xlu1 %1717  ;;  %v1736_v27 = vpack.c.bf16 %v1730_v13, %v1730_v13 }
 0x252   :  { %v1724_v1 = vsel %vm877_vm9, %v1718_v43, %v1720_v32  ;;  %v1725_v6 = vsel %vm877_vm9, %v1716_v29, %v1718_v43  ;;  %v1747_v44 = vsel %vm78_vm3, %v1735_v60, 0 }
 0x253   :  { %v1727_v58 = vmul.f32 %v1725_v6, %v3927_v14  ;;  %v1728_v28 = vmul.f32 %v1724_v1, %v3928_v26  ;;  %v1750_v29 = vsel %vm78_vm3, %v1736_v27, 0 }
 0x255   :  { %v1733_v16 = vpack.c.bf16 %v1727_v58, %v1727_v58  ;;  %v1734_v57 = vpack.c.bf16 %v1728_v28, %v1728_v28 }
 0x257   :  { %v1741_v7 = vsel %vm78_vm3, %v1733_v16, 0  ;;  %v1744_v38 = vsel %vm78_vm3, %v1734_v57, 0 }
 0x25b   :  { %2759 = vmatmul.msk.bf16.vlgmr.msra.gmra.mxu2 %vm74_vm4, %v2756_v47  ;;  %2760 = vmatmul.msk.bf16.vlgmr.msra.gmra.mxu3 %vm74_vm4, %v2756_v47 }
 0x25c   :  { %1692 = vmatpush.bf16.msra.mxu2 %v1654_v46  ;;  %1705 = vmatpush.bf16.msra.mxu3 %v1657_v56 }
 0x25d   :  { %2757 = vmatmul.msk.bf16.vlgmr.msra.gmra.mxu0 %vm74_vm4, %v2756_v47  ;;  %2758 = vmatmul.msk.bf16.vlgmr.msra.gmra.mxu1 %vm74_vm4, %v2756_v47  ;;  %v2766_v47 = vld [vmem:[%s3879_s4 + $0x1c] sm:$0xf] }
 0x25e   :  { %1666 = vmatpush.bf16.msra.mxu0 %v1648_v40  ;;  %1679 = vmatpush.bf16.msra.mxu1 %v1651_v37 }
 0x26b   :  { %2764 = vmatmul.msk.bf16.vlgmr.msrb.gmra.mxu2 %vm74_vm4, %v2761_v15  ;;  %2765 = vmatmul.msk.bf16.vlgmr.msrb.gmra.mxu3 %vm74_vm4, %v2761_v15 }
 0x26c   :  { %1785 = vmatpush.bf16.msrb.mxu2 %v1747_v44  ;;  %1798 = vmatpush.bf16.msrb.mxu3 %v1750_v29 }
 0x26d   :  { %2762 = vmatmul.msk.bf16.vlgmr.msrb.gmra.mxu0 %vm74_vm4, %v2761_v15  ;;  %2763 = vmatmul.msk.bf16.vlgmr.msrb.gmra.mxu1 %vm74_vm4, %v2761_v15 }
 0x26e   :  { %1759 = vmatpush.bf16.msrb.mxu0 %v1741_v7  ;;  %1772 = vmatpush.bf16.msrb.mxu1 %v1744_v38 }
 0x27b   :  { %2769 = vmatmul.msk.bf16.vlgmr.msra.gmra.mxu2 %vm74_vm4, %v2766_v47  ;;  %2770 = vmatmul.msk.bf16.vlgmr.msra.gmra.mxu3 %vm74_vm4, %v2766_v47 }
 0x27d   :  { %2767 = vmatmul.msk.bf16.vlgmr.msra.gmra.mxu0 %vm74_vm4, %v2766_v47  ;;  %2768 = vmatmul.msk.bf16.vlgmr.msra.gmra.mxu1 %vm74_vm4, %v2766_v47 }
 0x289   :  { %v1042_v53 = vpop.f32.mrf.mxu1  ;;  %v1029_v46 = vpop.f32.mrf.mxu0 }
 0x28a   :  { %v1073_v9 = vadd.f32 %v1042_v53, %v982_v62  ;;  %v1072_v1 = vadd.f32 %v1029_v46, %v982_v62 }
 0x28b   :  { %2774 = vmatmul.msk.bf16.vlgmr.msrb.gmra.mxu2 %vm74_vm4, %v2771_v45  ;;  %2775 = vmatmul.msk.bf16.vlgmr.msrb.gmra.mxu3 %vm74_vm4, %v2771_v45 }
 0x28d   :  { %2772 = vmatmul.msk.bf16.vlgmr.msrb.gmra.mxu0 %vm74_vm4, %v2771_v45  ;;  %2773 = vmatmul.msk.bf16.vlgmr.msrb.gmra.mxu1 %vm74_vm4, %v2771_v45 }
 0x28e   :  { %v1055_v56 = vpop.f32.mrf.mxu2  ;;  %v1068_v10 = vpop.f32.mrf.mxu3 }
 0x28f   :  { %v1074_v28 = vadd.f32 %v1055_v56, %v982_v62  ;;  %v1075_v60 = vadd.f32 %v1068_v10, %v982_v62 }
 0x291   :  { %v1044_v40 = vpop.f32.mrf.mxu1  ;;  %v1031_v37 = vpop.f32.mrf.mxu0 }
 0x296   :  { %v1057_v32 = vpop.f32.mrf.mxu2  ;;  %v1070_v43 = vpop.f32.mrf.mxu3 }
 0x299   :  { %v1122_v59 = vpop.f32.mrf.mxu0 }
 0x29a   :  { %v1135_v6 = vpop.f32.mrf.mxu1  ;;  %v1165_v58 = vadd.f32 %v1122_v59, %v1072_v1 }
 0x29b   :  { %v1166_v13 = vadd.f32 %v1135_v6, %v1073_v9 }
 0x29e   :  { %v1148_v27 = vpop.f32.mrf.mxu2  ;;  %v1161_v15 = vpop.f32.mrf.mxu3 }
 0x29f   :  { %v1167_v16 = vadd.f32 %v1148_v27, %v1074_v28  ;;  %v1168_v57 = vadd.f32 %v1161_v15, %v1075_v60 }
 0x2a1   :  { %v1124_v29 = vpop.f32.mrf.mxu0 }
 0x2a2   :  { %v1137_v44 = vpop.f32.mrf.mxu1 }
 0x2a6   :  { %v1150_v7 = vpop.f32.mrf.mxu2  ;;  %v1163_v38 = vpop.f32.mrf.mxu3 }
 0x2aa   :  { %v1215_v47 = vpop.f32.mrf.mxu0  ;;  %v1228_v45 = vpop.f32.mrf.mxu1 }
 0x2ab   :  { %v1258_v40 = vadd.f32 %v1215_v47, %v1165_v58  ;;  %v1259_v37 = vadd.f32 %v1228_v45, %v1166_v13 }
 0x2ae   :  { %v1241_v53 = vpop.f32.mrf.mxu2  ;;  %v1254_v46 = vpop.f32.mrf.mxu3 }
 0x2af   :  { %v1260_v32 = vadd.f32 %v1241_v53, %v1167_v16  ;;  %v1261_v43 = vadd.f32 %v1254_v46, %v1168_v57 }
 0x2b2   :  { %v1217_v9 = vpop.f32.mrf.mxu0  ;;  %v1230_v1 = vpop.f32.mrf.mxu1 }
 0x2b6   :  { %v1243_v56 = vpop.f32.mrf.mxu2  ;;  %v1256_v10 = vpop.f32.mrf.mxu3 }
 0x2ba   :  { %v1308_v62 = vpop.f32.mrf.mxu0  ;;  %v1321_v6 = vpop.f32.mrf.mxu1 }
 0x2bb   :  { %v1351_v59 = vadd.f32 %v1308_v62, %v1258_v40  ;;  %v1352_v28 = vadd.f32 %v1321_v6, %v1259_v37 }
 0x2be   :  { %v1334_v60 = vpop.f32.mrf.mxu2  ;;  %v1347_v27 = vpop.f32.mrf.mxu3 }
 0x2bf   :  { %v1353_v15 = vadd.f32 %v1334_v60, %v1260_v32  ;;  %v1354_v44 = vadd.f32 %v1347_v27, %v1261_v43 }
 0x2c2   :  { %v1310_v29 = vpop.f32.mrf.mxu0  ;;  %v1323_v7 = vpop.f32.mrf.mxu1 }
 0x2c6   :  { %v1336_v58 = vpop.f32.mrf.mxu2  ;;  %v1349_v13 = vpop.f32.mrf.mxu3 }
 0x2ca   :  { %v1389_v38 = vpop.f32.mrf.mxu0  ;;  %v1402_v47 = vpop.f32.mrf.mxu1 }
 0x2cb   :  { %v1432_v16 = vadd.f32 %v1389_v38, %v1351_v59  ;;  %v1433_v52 = vadd.f32 %v1402_v47, %v1352_v28 }
 0x2ce   :  { %v1415_v57 = vpop.f32.mrf.mxu2  ;;  %v1428_v45 = vpop.f32.mrf.mxu3 }
 0x2d2   :  { %v1391_v53 = vpop.f32.mrf.mxu0  ;;  %v1404_v46 = vpop.f32.mrf.mxu1 }
 0x2d6   :  { %v1417_v9 = vpop.f32.mrf.mxu2  ;;  %v1430_v1 = vpop.f32.mrf.mxu3 }
 0x2da   :  { %v1482_v56 = vpop.f32.mrf.mxu0  ;;  %v1495_v40 = vpop.f32.mrf.mxu1 }
 0x2db   :  { %v1526_v5 = vadd.f32 %v1495_v40, %v1433_v52 }
 0x2de   :  { %v1508_v37 = vpop.f32.mrf.mxu2  ;;  %v1521_v10 = vpop.f32.mrf.mxu3 }
 0x2e2   :  { %v1484_v62 = vpop.f32.mrf.mxu0  ;;  %v1497_v32 = vpop.f32.mrf.mxu1 }
 0x2e6   :  { %v1510_v43 = vpop.f32.mrf.mxu2  ;;  %v1523_v6 = vpop.f32.mrf.mxu3 }
 0x2e7   :  { %v1434_v43 = vadd.f32 %v1415_v57, %v1353_v15  ;;  %v1435_v6 = vadd.f32 %v1428_v45, %v1354_v44 }
 0x2e9   :  { %v1527_v2 = vadd.f32 %v1508_v37, %v1434_v43  ;;  %v1528_v3 = vadd.f32 %v1521_v10, %v1435_v6 }
 0x2ea   :  { %v1575_v60 = vpop.f32.mrf.mxu0  ;;  %v1588_v27 = vpop.f32.mrf.mxu1 }
 0x2eb   :  { %v1619_v39 = vadd.f32 %v1588_v27, %v1526_v5 }
 0x2ee   :  { %v1601_v29 = vpop.f32.mrf.mxu2  ;;  %v1614_v7 = vpop.f32.mrf.mxu3 }
 0x2ef   :  { %v1621_v23 = vadd.f32 %v1614_v7, %v1528_v3 }
 0x2f2   :  { %v1577_v58 = vpop.f32.mrf.mxu0  ;;  %v1590_v59 = vpop.f32.mrf.mxu1 }
 0x2f6   :  { %v1603_v13 = vpop.f32.mrf.mxu2  ;;  %v1616_v38 = vpop.f32.mrf.mxu3 }
 0x2f7   :  { %v1525_v13 = vadd.f32 %v1482_v56, %v1432_v16  ;;  %v1620_v38 = vadd.f32 %v1601_v29, %v1527_v2 }
 0x2f9   :  { %v1618_v24 = vadd.f32 %v1575_v60, %v1525_v13 }
 0x2fa   :  { %v1668_v53 = vpop.f32.mrf.mxu0  ;;  %v1681_v46 = vpop.f32.mrf.mxu1 }
 0x2fb   :  { %v1712_v61 = vadd.f32 %v1681_v46, %v1619_v39  ;;  %v1711_v47 = vadd.f32 %v1668_v53, %v1618_v24 }
 0x2fe   :  { %v1694_v9 = vpop.f32.mrf.mxu2  ;;  %v1707_v1 = vpop.f32.mrf.mxu3 }
 0x2ff   :  { %v1713_v22 = vadd.f32 %v1694_v9, %v1620_v38 }
 0x302   :  { %v1670_v26 = vpop.f32.mrf.mxu0  ;;  %v1683_v14 = vpop.f32.mrf.mxu1 }
 0x303   :  { %v1714_v26 = vadd.f32 %v1707_v1, %v1621_v23  ;;  %v1812_v23 = vld [vmem:[%s3880_s7] sm:$0x3] }
 0x306   :  { %v1696_v62 = vpop.f32.mrf.mxu2  ;;  %v1709_v32 = vpop.f32.mrf.mxu3 }
 0x30a   :  { %v1761_v58 = vpop.f32.mrf.mxu0  ;;  %v1774_v59 = vpop.f32.mrf.mxu1 }
 0x30b   :  { %v1805_v0 = vadd.f32 %v1774_v59, %v1712_v61  ;;  %v1804_v39 = vadd.f32 %v1761_v58, %v1711_v47 }
 0x30d   :  { %v3592_v14 = vmax.f32 %v1805_v0, 0.0  ;;  %v3604_v0 = vmax.f32 %v1804_v39, 0.0 }
 0x30e   :  { %v1787_v52 = vpop.f32.mrf.mxu2  ;;  %v1800_v28 = vpop.f32.mrf.mxu3 }
 0x30f   :  { %v1806_v15 = vadd.f32 %v1787_v52, %v1713_v22  ;;  %v1807_v44 = vadd.f32 %v1800_v28, %v1714_v26  ;;  %1820 = vrot.lane.b32.xlu0 %v3592_v14, %s2847_s9 }
 0x311   :  { %v3596_v5 = vmax.f32 %v1806_v15, 0.0  ;;  %v3598_v16 = vmax.f32 %v1807_v44, 0.0 }
 0x312   :  { %v1776_v3 = vpop.f32.mrf.mxu1  ;;  %v1763_v61 = vpop.f32.mrf.mxu0 }
 0x313   :  { %1824 = vrot.lane.b32.xlu2 %v3598_v16, %s2847_s9  ;;  %1822 = vrot.lane.b32.xlu1 %v3596_v5, %s2847_s9 }
 0x316   :  { %v1789_v22 = vpop.f32.mrf.mxu2  ;;  %v1802_v24 = vpop.f32.mrf.mxu3 }
 0x317   :  { %1818 = vrot.lane.b32.xlu0 %v3604_v0, %s2847_s9 }
 0x31b   :  { %1914 = vrot.lane.b32.xlu2 %v3596_v5, %s2848_s10  ;;  %1912 = vrot.lane.b32.xlu1 %v3592_v14, %s2848_s10 }
 0x31f   :  { %1916 = vrot.lane.b32.xlu0 %v3598_v16, %s2848_s10 }
 0x323   :  { %2005 = vrot.lane.b32.xlu2 %v3592_v14, %s2849_s15  ;;  %1910 = vrot.lane.b32.xlu1 %v3604_v0, %s2848_s10 }
 0x327   :  { %2007 = vrot.lane.b32.xlu0 %v3596_v5, %s2849_s15 }
 0x32b   :  { %2003 = vrot.lane.b32.xlu2 %v3604_v0, %s2849_s15  ;;  %2009 = vrot.lane.b32.xlu1 %v3598_v16, %s2849_s15 }
 0x32f   :  { %2098 = vrot.lane.b32.xlu0 %v3592_v14, %s2850_s0 }
 0x333   :  { %2102 = vrot.lane.b32.xlu2 %v3598_v16, %s2850_s0  ;;  %2100 = vrot.lane.b32.xlu1 %v3596_v5, %s2850_s0 }
 0x337   :  { %2096 = vrot.lane.b32.xlu0 %v3604_v0, %s2850_s0 }
 0x33b   :  { %2274 = vrot.lane.b32.xlu2 %v3596_v5, %s2851_s16  ;;  %2270 = vrot.lane.b32.xlu1 %v3604_v0, %s2851_s16 }
 0x33f   :  { %2276 = vrot.lane.b32.xlu0 %v3598_v16, %s2851_s16 }
 0x343   :  { %2363 = vrot.lane.b32.xlu2 %v3604_v0, %s2852_s17  ;;  %2272 = vrot.lane.b32.xlu1 %v3592_v14, %s2851_s16 }
 0x347   :  { %2367 = vrot.lane.b32.xlu0 %v3596_v5, %s2852_s17 }
 0x34b   :  { %2365 = vrot.lane.b32.xlu2 %v3592_v14, %s2852_s17  ;;  %2369 = vrot.lane.b32.xlu1 %v3598_v16, %s2852_s17 }
 0x34f   :  { %2456 = vrot.lane.b32.xlu0 %v3604_v0, %s2853_s18 }
 0x353   :  { %2462 = vrot.lane.b32.xlu2 %v3598_v16, %s2853_s18  ;;  %2460 = vrot.lane.b32.xlu1 %v3596_v5, %s2853_s18 }
 0x357   :  { %2458 = vrot.lane.b32.xlu0 %v3592_v14, %s2853_s18 }
 0x35b   :  { %2553 = vrot.lane.b32.xlu2 %v3596_v5, %s2854_s19  ;;  %2549 = vrot.lane.b32.xlu1 %v3604_v0, %s2854_s19 }
 0x35f   :  { %2555 = vrot.lane.b32.xlu0 %v3598_v16, %s2854_s19 }
 0x363   :  { %1815 = vperm.xlu2 %2829, %v1812_v23   ;;  %2551 = vrot.lane.b32.xlu1 %v3592_v14, %s2854_s19 }
 0x36d   :  { %v1825_v2 = vpop.permute.xlu2 %1824 }
 0x375   :  { %v1915_v57 = vpop.permute.xlu2 %1914 }
 0x37d   :  { %v2006_v56 = vpop.permute.xlu2 %2005 }
 0x381   :  { %v1821_v45 = vpop.permute.xlu0 %1820 }
 0x385   :  { %v1823_v40 = vpop.permute.xlu1 %1822  ;;  %v2004_v59 = vpop.permute.xlu2 %2003 }
 0x386   :  { %v1826_v37 = vsel %vm50_vm1, %v1823_v40, %v1825_v2  ;;  %v1827_v10 = vsel %vm50_vm1, %v1821_v45, %v1823_v40  ;;  %v2013_v26 = vsel %vm260_vm2, %v2004_v59, %v2006_v56 }
 0x387   :  { %v1832_v60 = vmul.f32 %v1827_v10, %v3014_v20  ;;  %v1833_v27 = vmul.f32 %v1826_v37, %v3016_v21  ;;  %v1834_v20 = vld [vmem:[%s3881_s6] sm:$0x1]  ;;  %v2016_v44 = vmul.f32 %v2013_v26, %v3019_v25  ;;  %v2189_v26 = vmul.f32 %v3604_v0, %v3123_v50  ;;  %v2785_v50 = vld [vmem:[%s3881_s6 + $0x2] sm:$0x1] }
 0x389   :  { %v1837_v29 = vpack.c.bf16 %v1832_v60, %v1832_v60  ;;  %v1838_v7 = vpack.c.bf16 %v1833_v27, %v1833_v27  ;;  %v1819_v53 = vpop.permute.xlu0 %1818 }
 0x38a   :  { %v1828_v46 = vsel %vm50_vm1, %v1819_v53, %v1821_v45  ;;  %v1829_v9 = vsel %vm50_vm1, %v1825_v2, %v1819_v53  ;;  %v2022_v2 = vpack.c.bf16 %v2016_v44, %v2016_v44 }
 0x38b   :  { %v1830_v1 = vmul.f32 %v1829_v9, %v3010_v18  ;;  %v1831_v62 = vmul.f32 %v1828_v46, %v3012_v19  ;;  %v1849_v32 = vsel %vm78_vm3, %v1837_v29, 0  ;;  %v1852_v43 = vsel %vm78_vm3, %v1838_v7, 0 }
 0x38c   :  { %1887 = vmatpush.bf16.msra.mxu2 %v1849_v32  ;;  %1900 = vmatpush.bf16.msra.mxu3 %v1852_v43 }
 0x38d   :  { %v1835_v21 = vpack.c.bf16 %v1830_v1, %v1830_v1  ;;  %v1836_v6 = vpack.c.bf16 %v1831_v62, %v1831_v62  ;;  %v1913_v58 = vpop.permute.xlu1 %1912 }
 0x38e   :  { %v1919_v13 = vsel %vm155_vm0, %v1913_v58, %v1915_v57 }
 0x38f   :  { %v1924_v18 = vmul.f32 %v1919_v13, %v2993_v12  ;;  %2778 = vmatmul.msk.bf16.vlgmr.msra.gmra.mxu2 %vm74_vm4, %v1834_v20  ;;  %2779 = vmatmul.msk.bf16.vlgmr.msra.gmra.mxu3 %vm74_vm4, %v1834_v20  ;;  %v1843_v19 = vsel %vm78_vm3, %v1835_v21, 0  ;;  %v1846_v38 = vsel %vm78_vm3, %v1836_v6, 0  ;;  %v2191_v6 = vmul.f32 %v3596_v5, %v3129_v54 }
 0x390   :  { %1861 = vmatpush.bf16.msra.mxu0 %v1843_v19  ;;  %1874 = vmatpush.bf16.msra.mxu1 %v1846_v38 }
 0x391   :  { %v1930_v52 = vpack.c.bf16 %v1924_v18, %v1924_v18  ;;  %v1917_v28 = vpop.permute.xlu0 %1916 }
 0x392   :  { %v1918_v47 = vsel %vm155_vm0, %v1915_v57, %v1917_v28 }
 0x393   :  { %v1925_v12 = vmul.f32 %v1918_v47, %v3042_v42  ;;  %2776 = vmatmul.msk.bf16.vlgmr.msra.gmra.mxu0 %vm74_vm4, %v1834_v20  ;;  %2777 = vmatmul.msk.bf16.vlgmr.msra.gmra.mxu1 %vm74_vm4, %v1834_v20  ;;  %v1942_v15 = vsel %vm78_vm3, %v1930_v52, 0  ;;  %v2190_v52 = vmul.f32 %v3592_v14, %v3125_v51 }
 0x394   :  { %1980 = vmatpush.bf16.msrb.mxu2 %v1942_v15 }
 0x395   :  { %v1931_v39 = vpack.c.bf16 %v1925_v12, %v1925_v12  ;;  %v1911_v3 = vpop.permute.xlu1 %1910  ;;  %v2195_v12 = vpack.c.bf16 %v2189_v26, %v2189_v26  ;;  %v2196_v15 = vpack.c.bf16 %v2190_v52, %v2190_v52 }
 0x396   :  { %v1920_v61 = vsel %vm155_vm0, %v1911_v3, %v1913_v58  ;;  %v1921_v22 = vsel %vm155_vm0, %v1917_v28, %v1911_v3  ;;  %v2192_v58 = vmul.f32 %v3598_v16, %v3131_v55  ;;  %v2197_v55 = vpack.c.bf16 %v2191_v6, %v2191_v6  ;;  %v3932_v6 = vld [vmem:[#allocation4_spill] sm:$0xff] }
 0x397   :  { %v1922_v24 = vmul.f32 %v1921_v22, %v3040_v41  ;;  %v1923_v42 = vmul.f32 %v1920_v61, %v3037_v35  ;;  %v1945_v23 = vsel %vm78_vm3, %v1931_v39, 0  ;;  %v2032_v35 = vsel %vm78_vm3, %v2022_v2, 0  ;;  %v2780_v41 = vld [vmem:[%s3881_s6 + $0x1] sm:$0x1] }
 0x398   :  { %1993 = vmatpush.bf16.msrb.mxu3 %v1945_v23  ;;  %v2198_v5 = vpack.c.bf16 %v2192_v58, %v2192_v58  ;;  %v2203_v22 = vsel %vm78_vm3, %v2195_v12, 0 }
 0x399   :  { %v1928_v57 = vpack.c.bf16 %v1922_v24, %v1922_v24  ;;  %v1929_v45 = vpack.c.bf16 %v1923_v42, %v1923_v42  ;;  %v2008_v25 = vpop.permute.xlu0 %2007  ;;  %v2206_v24 = vsel %vm78_vm3, %v2196_v15, 0 }
 0x39a   :  { %v2012_v40 = vsel %vm260_vm2, %v2006_v56, %v2008_v25 }
 0x39b   :  { %v2017_v37 = vmul.f32 %v2012_v40, %v3069_v63  ;;  %v1936_v10 = vsel %vm78_vm3, %v1928_v57, 0  ;;  %v1939_v60 = vsel %vm78_vm3, %v1929_v45, 0 }
 0x39c   :  { %1954 = vmatpush.bf16.msrb.mxu0 %v1936_v10  ;;  %1967 = vmatpush.bf16.msrb.mxu1 %v1939_v60 }
 0x39d   :  { %v2023_v27 = vpack.c.bf16 %v2017_v37, %v2017_v37  ;;  %v2010_v29 = vpop.permute.xlu1 %2009 }
 0x39e   :  { %v2011_v56 = vsel %vm260_vm2, %v2008_v25, %v2010_v29  ;;  %v2014_v63 = vsel %vm260_vm2, %v2010_v29, %v2004_v59 }
 0x39f   :  { %v2015_v7 = vmul.f32 %v2014_v63, %v3072_v4  ;;  %v2018_v53 = vmul.f32 %v2011_v56, %v3079_v11  ;;  %2783 = vmatmul.msk.bf16.vlgmr.msrb.gmra.mxu2 %vm74_vm4, %v2780_v41  ;;  %2784 = vmatmul.msk.bf16.vlgmr.msrb.gmra.mxu3 %vm74_vm4, %v2780_v41  ;;  %v2035_v46 = vsel %vm78_vm3, %v2023_v27, 0  ;;  %v2103_v11 = vpop.permute.xlu2 %2102  ;;  %v2790_v27 = vld [vmem:[%s3881_s6 + $0x3] sm:$0x1] }
 0x3a0   :  { %2060 = vmatpush.bf16.msra.mxu1 %v2032_v35  ;;  %2073 = vmatpush.bf16.msra.mxu2 %v2035_v46 }
 0x3a1   :  { %v2021_v9 = vpack.c.bf16 %v2015_v7, %v2015_v7  ;;  %v2024_v1 = vpack.c.bf16 %v2018_v53, %v2018_v53  ;;  %v2099_v62 = vpop.permute.xlu0 %2098 }
 0x3a3   :  { %2781 = vmatmul.msk.bf16.vlgmr.msrb.gmra.mxu0 %vm74_vm4, %v2780_v41  ;;  %2782 = vmatmul.msk.bf16.vlgmr.msrb.gmra.mxu1 %vm74_vm4, %v2780_v41  ;;  %v2029_v32 = vsel %vm78_vm3, %v2021_v9, 0  ;;  %v2038_v4 = vsel %vm78_vm3, %v2024_v1, 0  ;;  %v3929_v1 = vld [vmem:[#allocation5_spill] sm:$0xff] }
 0x3a4   :  { %2047 = vmatpush.bf16.msra.mxu0 %v2029_v32  ;;  %2086 = vmatpush.bf16.msra.mxu3 %v2038_v4  ;;  %v3930_v32 = vld [vmem:[#allocation3_spill] sm:$0xff] }
 0x3a5   :  { %v2101_v43 = vpop.permute.xlu1 %2100 }
 0x3a6   :  { %v2104_v20 = vsel %vm365_vm5, %v2101_v43, %v2103_v11  ;;  %v2105_v21 = vsel %vm365_vm5, %v2099_v62, %v2101_v43 }
 0x3a7   :  { %v2110_v59 = vmul.f32 %v2105_v21, %v3096_v30  ;;  %v2111_v13 = vmul.f32 %v2104_v20, %v3101_v33  ;;  %v2275_v3 = vpop.permute.xlu2 %2274  ;;  %v3931_v20 = vld [vmem:[#allocation2_spill] sm:$0xff] }
 0x3a9   :  { %v2116_v18 = vpack.c.bf16 %v2110_v59, %v2110_v59  ;;  %v2117_v19 = vpack.c.bf16 %v2111_v13, %v2111_v13  ;;  %v2097_v38 = vpop.permute.xlu0 %2096 }
 0x3aa   :  { %v2106_v28 = vsel %vm365_vm5, %v2097_v38, %v2099_v62  ;;  %v2107_v54 = vsel %vm365_vm5, %v2103_v11, %v2097_v38 }
 0x3ab   :  { %v2108_v30 = vmul.f32 %v2107_v54, %v3121_v49  ;;  %v2109_v33 = vmul.f32 %v2106_v28, %v3119_v48  ;;  %v2128_v16 = vsel %vm78_vm3, %v2116_v18, 0  ;;  %v2131_v47 = vsel %vm78_vm3, %v2117_v19, 0  ;;  %v2795_v19 = vld [vmem:[%s3881_s6 + $0x4] sm:$0x1] }
 0x3ac   :  { %2166 = vmatpush.bf16.msrb.mxu2 %v2128_v16  ;;  %2179 = vmatpush.bf16.msrb.mxu3 %v2131_v47  ;;  %v2209_v48 = vsel %vm78_vm3, %v2197_v55, 0  ;;  %v2212_v49 = vsel %vm78_vm3, %v2198_v5, 0 }
 0x3ad   :  { %v2114_v51 = vpack.c.bf16 %v2108_v30, %v2108_v30  ;;  %v2115_v14 = vpack.c.bf16 %v2109_v33, %v2109_v33  ;;  %v2271_v0 = vpop.permute.xlu1 %2270 }
 0x3af   :  { %2788 = vmatmul.msk.bf16.vlgmr.msra.gmra.mxu2 %vm74_vm4, %v2785_v50  ;;  %2789 = vmatmul.msk.bf16.vlgmr.msra.gmra.mxu3 %vm74_vm4, %v2785_v50  ;;  %v2122_v44 = vsel %vm78_vm3, %v2114_v51, 0  ;;  %v2125_v39 = vsel %vm78_vm3, %v2115_v14, 0  ;;  %v2364_v37 = vpop.permute.xlu2 %2363  ;;  %v3934_v14 = vld [vmem:[#allocation9_spill] sm:$0xff] }
 0x3b0   :  { %2247 = vmatpush.bf16.msra.mxu2 %v2209_v48  ;;  %2260 = vmatpush.bf16.msra.mxu3 %v2212_v49 }
 0x3b1   :  { %2140 = vmatpush.bf16.msrb.mxu0 %v2122_v44  ;;  %2153 = vmatpush.bf16.msrb.mxu1 %v2125_v39  ;;  %v2277_v61 = vpop.permute.xlu0 %2276  ;;  %v3935_v44 = vld [vmem:[#allocation6_spill] sm:$0xff] }
 0x3b2   :  { %v2278_v42 = vsel %vm562_vm6, %v2275_v3, %v2277_v61  ;;  %v2281_v23 = vsel %vm562_vm6, %v2277_v61, %v2271_v0 }
 0x3b3   :  { %2786 = vmatmul.msk.bf16.vlgmr.msra.gmra.mxu0 %vm74_vm4, %v2785_v50  ;;  %2787 = vmatmul.msk.bf16.vlgmr.msra.gmra.mxu1 %vm74_vm4, %v2785_v50  ;;  %v2284_v57 = vmul.f32 %v2278_v42, %v3170_v34  ;;  %v2285_v45 = vmul.f32 %v2281_v23, %v3164_v31  ;;  %v3933_v50 = vld [vmem:[#allocation7_spill] sm:$0xff] }
 0x3b5   :  { %2221 = vmatpush.bf16.msra.mxu0 %v2203_v22  ;;  %2234 = vmatpush.bf16.msra.mxu1 %v2206_v24  ;;  %v2273_v2 = vpop.permute.xlu1 %2272  ;;  %v2290_v10 = vpack.c.bf16 %v2284_v57, %v2284_v57  ;;  %v2291_v60 = vpack.c.bf16 %v2285_v45, %v2285_v45  ;;  %v2800_v24 = vld [vmem:[%s3881_s6 + $0x5] sm:$0x1] }
 0x3b6   :  { %v2279_v25 = vsel %vm562_vm6, %v2273_v2, %v2275_v3  ;;  %v2280_v40 = vsel %vm562_vm6, %v2271_v0, %v2273_v2  ;;  %v3936_v3 = vld [vmem:[#allocation8_spill] sm:$0xff] }
 0x3b7   :  { %v2282_v35 = vmul.f32 %v2280_v40, %v3166_v17  ;;  %v2283_v41 = vmul.f32 %v2279_v25, %v3172_v36  ;;  %v2302_v31 = vsel %vm78_vm3, %v2290_v10, 0  ;;  %v2305_v56 = vsel %vm78_vm3, %v2291_v60, 0  ;;  %v2366_v9 = vpop.permute.xlu2 %2365 }
 0x3b8   :  { %v2373_v11 = vsel %vm667_vm7, %v2364_v37, %v2366_v9 }
 0x3b9   :  { %v2288_v34 = vpack.c.bf16 %v2282_v35, %v2282_v35  ;;  %v2289_v29 = vpack.c.bf16 %v2283_v41, %v2283_v41  ;;  %v2368_v63 = vpop.permute.xlu0 %2367  ;;  %v2375_v21 = vmul.f32 %v2373_v11, %v3931_v20  ;;  %v3937_v41 = vld [vmem:[#allocation13_spill] sm:$0xff]  ;;  %v2815_v20 = vld [vmem:[%s3881_s6 + $0x8] sm:$0x1] }
 0x3ba   :  { %v2372_v43 = vsel %vm667_vm7, %v2366_v9, %v2368_v63  ;;  %v2805_v9 = vld [vmem:[%s3881_s6 + $0x6] sm:$0x1] }
 0x3bb   :  { %v2296_v36 = vsel %vm78_vm3, %v2288_v34, 0  ;;  %v2299_v7 = vsel %vm78_vm3, %v2289_v29, 0  ;;  %v2376_v58 = vmul.f32 %v2372_v43, %v3932_v6  ;;  %v2381_v38 = vpack.c.bf16 %v2375_v21, %v2375_v21  ;;  %v3938_v34 = vld [vmem:[#allocation10_spill] sm:$0xff] }
 0x3bc   :  { %v2810_v43 = vld [vmem:[%s3881_s6 + $0x7] sm:$0x1] }
 0x3bd   :  { %v2370_v17 = vpop.permute.xlu1 %2369  ;;  %v2382_v26 = vpack.c.bf16 %v2376_v58, %v2376_v58  ;;  %v2389_v5 = vsel %vm78_vm3, %v2381_v38, 0 }
 0x3be   :  { %v2371_v53 = vsel %vm667_vm7, %v2368_v63, %v2370_v17  ;;  %v2374_v46 = vsel %vm667_vm7, %v2370_v17, %v2364_v37 }
 0x3bf   :  { %2793 = vmatmul.msk.bf16.vlgmr.msrb.gmra.mxu2 %vm74_vm4, %v2790_v27  ;;  %2794 = vmatmul.msk.bf16.vlgmr.msrb.gmra.mxu3 %vm74_vm4, %v2790_v27  ;;  %v2377_v62 = vmul.f32 %v2371_v53, %v3929_v1  ;;  %v2378_v4 = vmul.f32 %v2374_v46, %v3930_v32  ;;  %v2463_v55 = vpop.permute.xlu2 %2462  ;;  %v2392_v30 = vsel %vm78_vm3, %v2382_v26, 0  ;;  %v3940_v53 = vld [vmem:[#allocation12_spill] sm:$0xff] }
 0x3c0   :  { %2340 = vmatpush.bf16.msrb.mxu2 %v2302_v31  ;;  %2353 = vmatpush.bf16.msrb.mxu3 %v2305_v56 }
 0x3c1   :  { %v2383_v59 = vpack.c.bf16 %v2377_v62, %v2377_v62  ;;  %v2384_v13 = vpack.c.bf16 %v2378_v4, %v2378_v4  ;;  %v2457_v18 = vpop.permute.xlu0 %2456 }
 0x3c2   :  { %v2467_v33 = vsel %vm772_vm8, %v2463_v55, %v2457_v18 }
 0x3c3   :  { %2791 = vmatmul.msk.bf16.vlgmr.msrb.gmra.mxu0 %vm74_vm4, %v2790_v27  ;;  %2792 = vmatmul.msk.bf16.vlgmr.msrb.gmra.mxu1 %vm74_vm4, %v2790_v27  ;;  %v2395_v52 = vsel %vm78_vm3, %v2383_v59, 0  ;;  %v2398_v28 = vsel %vm78_vm3, %v2384_v13, 0  ;;  %v2471_v51 = vmul.f32 %v2467_v33, %v3933_v50 }
 0x3c4   :  { %2314 = vmatpush.bf16.msrb.mxu0 %v2296_v36  ;;  %2327 = vmatpush.bf16.msrb.mxu1 %v2299_v7  ;;  %v3939_v36 = vld [vmem:[#allocation11_spill] sm:$0xff] }
 0x3c5   :  { %v2461_v54 = vpop.permute.xlu1 %2460  ;;  %v2477_v48 = vpack.c.bf16 %v2471_v51, %v2471_v51 }
 0x3c6   :  { %v2464_v16 = vsel %vm772_vm8, %v2461_v54, %v2463_v55 }
 0x3c7   :  { %v2470_v0 = vmul.f32 %v2464_v16, %v3934_v14  ;;  %v2491_v57 = vsel %vm78_vm3, %v2477_v48, 0  ;;  %v2554_v25 = vpop.permute.xlu2 %2553 }
 0x3c9   :  { %v2459_v47 = vpop.permute.xlu0 %2458  ;;  %v2476_v49 = vpack.c.bf16 %v2470_v0, %v2470_v0 }
 0x3ca   :  { %v2465_v12 = vsel %vm772_vm8, %v2459_v47, %v2461_v54  ;;  %v2466_v15 = vsel %vm772_vm8, %v2457_v18, %v2459_v47 }
 0x3cb   :  { %v2468_v39 = vmul.f32 %v2466_v15, %v3935_v44  ;;  %v2469_v61 = vmul.f32 %v2465_v12, %v3936_v3  ;;  %v2488_v2 = vsel %vm78_vm3, %v2476_v49, 0 }
 0x3cd   :  { %v2550_v22 = vpop.permute.xlu1 %2549  ;;  %v2474_v42 = vpack.c.bf16 %v2468_v39, %v2468_v39  ;;  %v2475_v23 = vpack.c.bf16 %v2469_v61, %v2469_v61 }
 0x3cf   :  { %2798 = vmatmul.msk.bf16.vlgmr.msra.gmra.mxu2 %vm74_vm4, %v2795_v19  ;;  %2799 = vmatmul.msk.bf16.vlgmr.msra.gmra.mxu3 %vm74_vm4, %v2795_v19  ;;  %v2482_v40 = vsel %vm78_vm3, %v2474_v42, 0  ;;  %v2485_v37 = vsel %vm78_vm3, %v2475_v23, 0  ;;  %v1816_v26 = vpop.permute.xlu2 %1815 }
 0x3d0   :  { %2433 = vmatpush.bf16.msra.mxu2 %v2395_v52  ;;  %2446 = vmatpush.bf16.msra.mxu3 %v2398_v28 }
 0x3d1   :  { %v2556_v45 = vpop.permute.xlu0 %2555 }
 0x3d2   :  { %v2557_v10 = vsel %vm877_vm9, %v2554_v25, %v2556_v45  ;;  %v2560_v60 = vsel %vm877_vm9, %v2556_v45, %v2550_v22 }
 0x3d3   :  { %2796 = vmatmul.msk.bf16.vlgmr.msra.gmra.mxu0 %vm74_vm4, %v2795_v19  ;;  %2797 = vmatmul.msk.bf16.vlgmr.msra.gmra.mxu1 %vm74_vm4, %v2795_v19  ;;  %v2563_v27 = vmul.f32 %v2557_v10, %v3937_v41  ;;  %v2564_v29 = vmul.f32 %v2560_v60, %v3938_v34 }
 0x3d4   :  { %2407 = vmatpush.bf16.msra.mxu0 %v2389_v5  ;;  %2420 = vmatpush.bf16.msra.mxu1 %v2392_v30 }
 0x3d5   :  { %v2552_v35 = vpop.permute.xlu1 %2551  ;;  %v2569_v63 = vpack.c.bf16 %v2563_v27, %v2563_v27  ;;  %v2570_v17 = vpack.c.bf16 %v2564_v29, %v2564_v29 }
 0x3d6   :  { %v2558_v31 = vsel %vm877_vm9, %v2552_v35, %v2554_v25  ;;  %v2559_v56 = vsel %vm877_vm9, %v2550_v22, %v2552_v35 }
 0x3d7   :  { %v2561_v7 = vmul.f32 %v2559_v56, %v3939_v36  ;;  %v2562_v46 = vmul.f32 %v2558_v31, %v3940_v53  ;;  %v2581_v32 = vsel %vm78_vm3, %v2569_v63, 0  ;;  %v2584_v8 = vsel %vm78_vm3, %v2570_v17, 0 }
 0x3d9   :  { %v2567_v1 = vpack.c.bf16 %v2561_v7, %v2561_v7  ;;  %v2568_v62 = vpack.c.bf16 %v2562_v46, %v2562_v46 }
 0x3db   :  { %v2575_v4 = vsel %vm78_vm3, %v2567_v1, 0  ;;  %v2578_v11 = vsel %vm78_vm3, %v2568_v62, 0 }
 0x3df   :  { %2803 = vmatmul.msk.bf16.vlgmr.msrb.gmra.mxu2 %vm74_vm4, %v2800_v24  ;;  %2804 = vmatmul.msk.bf16.vlgmr.msrb.gmra.mxu3 %vm74_vm4, %v2800_v24 }
 0x3e0   :  { %2526 = vmatpush.bf16.msrb.mxu2 %v2488_v2  ;;  %2539 = vmatpush.bf16.msrb.mxu3 %v2491_v57 }
 0x3e3   :  { %2801 = vmatmul.msk.bf16.vlgmr.msrb.gmra.mxu0 %vm74_vm4, %v2800_v24  ;;  %2802 = vmatmul.msk.bf16.vlgmr.msrb.gmra.mxu1 %vm74_vm4, %v2800_v24 }
 0x3e4   :  { %2500 = vmatpush.bf16.msrb.mxu0 %v2482_v40  ;;  %2513 = vmatpush.bf16.msrb.mxu1 %v2485_v37 }
 0x3ef   :  { %2808 = vmatmul.msk.bf16.vlgmr.msra.gmra.mxu2 %vm74_vm4, %v2805_v9  ;;  %2809 = vmatmul.msk.bf16.vlgmr.msra.gmra.mxu3 %vm74_vm4, %v2805_v9 }
 0x3f0   :  { %2619 = vmatpush.bf16.msra.mxu2 %v2581_v32  ;;  %2632 = vmatpush.bf16.msra.mxu3 %v2584_v8 }
 0x3f3   :  { %2806 = vmatmul.msk.bf16.vlgmr.msra.gmra.mxu0 %vm74_vm4, %v2805_v9  ;;  %2807 = vmatmul.msk.bf16.vlgmr.msra.gmra.mxu1 %vm74_vm4, %v2805_v9 }
 0x3f4   :  { %2593 = vmatpush.bf16.msra.mxu0 %v2575_v4  ;;  %2606 = vmatpush.bf16.msra.mxu1 %v2578_v11 }
 0x3ff   :  { %2813 = vmatmul.msk.bf16.vlgmr.msrb.gmra.mxu2 %vm74_vm4, %v2810_v43  ;;  %2814 = vmatmul.msk.bf16.vlgmr.msrb.gmra.mxu3 %vm74_vm4, %v2810_v43 }
 0x403   :  { %2811 = vmatmul.msk.bf16.vlgmr.msrb.gmra.mxu0 %vm74_vm4, %v2810_v43  ;;  %2812 = vmatmul.msk.bf16.vlgmr.msrb.gmra.mxu1 %vm74_vm4, %v2810_v43 }
 0x40f   :  { %2818 = vmatmul.msk.bf16.vlgmr.msra.gmra.mxu2 %vm74_vm4, %v2815_v20  ;;  %2819 = vmatmul.msk.bf16.vlgmr.msra.gmra.mxu3 %vm74_vm4, %v2815_v20 }
 0x410   :  { %v1863_v21 = vpop.f32.mrf.mxu0  ;;  %v1876_v6 = vpop.f32.mrf.mxu1 }
 0x411   :  { %v1906_v52 = vadd.f32 %v1863_v21, %v1816_v26  ;;  %v1907_v28 = vadd.f32 %v1876_v6, %v1816_v26 }
 0x412   :  { %v1889_v58 = vpop.f32.mrf.mxu2  ;;  %v1902_v59 = vpop.f32.mrf.mxu3 }
 0x413   :  { %2816 = vmatmul.msk.bf16.vlgmr.msra.gmra.mxu0 %vm74_vm4, %v2815_v20  ;;  %2817 = vmatmul.msk.bf16.vlgmr.msra.gmra.mxu1 %vm74_vm4, %v2815_v20  ;;  %v1908_v5 = vadd.f32 %v1889_v58, %v1816_v26  ;;  %v1909_v30 = vadd.f32 %v1902_v59, %v1816_v26 }
 0x418   :  { %v1865_v13 = vpop.f32.mrf.mxu0  ;;  %v1878_v18 = vpop.f32.mrf.mxu1 }
 0x41a   :  { %v1891_v19 = vpop.f32.mrf.mxu2  ;;  %v1904_v38 = vpop.f32.mrf.mxu3 }
 0x420   :  { %v1956_v54 = vpop.f32.mrf.mxu0  ;;  %v1969_v55 = vpop.f32.mrf.mxu1 }
 0x421   :  { %v1999_v33 = vadd.f32 %v1956_v54, %v1906_v52  ;;  %v2000_v16 = vadd.f32 %v1969_v55, %v1907_v28 }
 0x422   :  { %v1982_v47 = vpop.f32.mrf.mxu2  ;;  %v1995_v50 = vpop.f32.mrf.mxu3 }
 0x423   :  { %v2001_v51 = vadd.f32 %v1982_v47, %v1908_v5  ;;  %v2002_v14 = vadd.f32 %v1995_v50, %v1909_v30 }
 0x428   :  { %v1958_v0 = vpop.f32.mrf.mxu0  ;;  %v1971_v12 = vpop.f32.mrf.mxu1 }
 0x42a   :  { %v1984_v15 = vpop.f32.mrf.mxu2  ;;  %v1997_v48 = vpop.f32.mrf.mxu3 }
 0x430   :  { %v2049_v49 = vpop.f32.mrf.mxu0  ;;  %v2062_v44 = vpop.f32.mrf.mxu1 }
 0x431   :  { %v2092_v39 = vadd.f32 %v2049_v49, %v1999_v33  ;;  %v2093_v3 = vadd.f32 %v2062_v44, %v2000_v16 }
 0x432   :  { %v2075_v61 = vpop.f32.mrf.mxu2  ;;  %v2088_v22 = vpop.f32.mrf.mxu3 }
 0x433   :  { %v2094_v24 = vadd.f32 %v2075_v61, %v2001_v51  ;;  %v2095_v42 = vadd.f32 %v2088_v22, %v2002_v14 }
 0x438   :  { %v2051_v23 = vpop.f32.mrf.mxu0  ;;  %v2064_v2 = vpop.f32.mrf.mxu1 }
 0x43a   :  { %v2077_v57 = vpop.f32.mrf.mxu2  ;;  %v2090_v45 = vpop.f32.mrf.mxu3 }
 0x440   :  { %v2142_v25 = vpop.f32.mrf.mxu0  ;;  %v2155_v40 = vpop.f32.mrf.mxu1 }
 0x441   :  { %v2185_v37 = vadd.f32 %v2142_v25, %v2092_v39  ;;  %v2186_v10 = vadd.f32 %v2155_v40, %v2093_v3 }
 0x442   :  { %v2168_v60 = vpop.f32.mrf.mxu2  ;;  %v2181_v35 = vpop.f32.mrf.mxu3 }
 0x443   :  { %v2187_v41 = vadd.f32 %v2168_v60, %v2094_v24  ;;  %v2188_v27 = vadd.f32 %v2181_v35, %v2095_v42 }
 0x448   :  { %v2144_v34 = vpop.f32.mrf.mxu0  ;;  %v2157_v29 = vpop.f32.mrf.mxu1 }
 0x44a   :  { %v2170_v31 = vpop.f32.mrf.mxu2  ;;  %v2183_v56 = vpop.f32.mrf.mxu3 }
 0x450   :  { %v2223_v63 = vpop.f32.mrf.mxu0  ;;  %v2236_v17 = vpop.f32.mrf.mxu1 }
 0x451   :  { %v2266_v33 = vadd.f32 %v2223_v63, %v2185_v37  ;;  %v2267_v16 = vadd.f32 %v2236_v17, %v2186_v10 }
 0x452   :  { %v2249_v36 = vpop.f32.mrf.mxu2  ;;  %v2262_v7 = vpop.f32.mrf.mxu3 }
 0x453   :  { %v2268_v51 = vadd.f32 %v2249_v36, %v2187_v41  ;;  %v2269_v14 = vadd.f32 %v2262_v7, %v2188_v27 }
 0x458   :  { %v2225_v53 = vpop.f32.mrf.mxu0  ;;  %v2238_v46 = vpop.f32.mrf.mxu1 }
 0x45a   :  { %v2251_v9 = vpop.f32.mrf.mxu2  ;;  %v2264_v1 = vpop.f32.mrf.mxu3 }
 0x460   :  { %v2316_v62 = vpop.f32.mrf.mxu0  ;;  %v2329_v32 = vpop.f32.mrf.mxu1 }
 0x461   :  { %v2359_v0 = vadd.f32 %v2316_v62, %v2266_v33  ;;  %v2360_v12 = vadd.f32 %v2329_v32, %v2267_v16 }
 0x462   :  { %v2342_v8 = vpop.f32.mrf.mxu2  ;;  %v2355_v4 = vpop.f32.mrf.mxu3 }
 0x463   :  { %v2361_v15 = vadd.f32 %v2342_v8, %v2268_v51  ;;  %v2362_v48 = vadd.f32 %v2355_v4, %v2269_v14 }
 0x468   :  { %v2318_v11 = vpop.f32.mrf.mxu0  ;;  %v2331_v43 = vpop.f32.mrf.mxu1 }
 0x46a   :  { %v2344_v20 = vpop.f32.mrf.mxu2  ;;  %v2357_v21 = vpop.f32.mrf.mxu3 }
 0x470   :  { %v2409_v6 = vpop.f32.mrf.mxu0  ;;  %v2422_v58 = vpop.f32.mrf.mxu1 }
 0x471   :  { %v2452_v49 = vadd.f32 %v2409_v6, %v2359_v0  ;;  %v2453_v44 = vadd.f32 %v2422_v58, %v2360_v12 }
 0x472   :  { %v2435_v59 = vpop.f32.mrf.mxu2  ;;  %v2448_v13 = vpop.f32.mrf.mxu3 }
 0x473   :  { %v2454_v39 = vadd.f32 %v2435_v59, %v2361_v15  ;;  %v2455_v3 = vadd.f32 %v2448_v13, %v2362_v48 }
 0x478   :  { %v2411_v18 = vpop.f32.mrf.mxu0  ;;  %v2424_v19 = vpop.f32.mrf.mxu1 }
 0x47a   :  { %v2437_v38 = vpop.f32.mrf.mxu2  ;;  %v2450_v26 = vpop.f32.mrf.mxu3 }
 0x480   :  { %v2502_v52 = vpop.f32.mrf.mxu0  ;;  %v2515_v28 = vpop.f32.mrf.mxu1 }
 0x481   :  { %v2545_v61 = vadd.f32 %v2502_v52, %v2452_v49  ;;  %v2546_v22 = vadd.f32 %v2515_v28, %v2453_v44 }
 0x482   :  { %v2528_v54 = vpop.f32.mrf.mxu2  ;;  %v2541_v55 = vpop.f32.mrf.mxu3 }
 0x483   :  { %v2547_v23 = vadd.f32 %v2528_v54, %v2454_v39  ;;  %v2548_v2 = vadd.f32 %v2541_v55, %v2455_v3 }
 0x488   :  { %v2504_v5 = vpop.f32.mrf.mxu0  ;;  %v2517_v30 = vpop.f32.mrf.mxu1 }
 0x48a   :  { %v2530_v47 = vpop.f32.mrf.mxu2  ;;  %v2543_v50 = vpop.f32.mrf.mxu3 }
 0x490   :  { %v2595_v24 = vpop.f32.mrf.mxu0  ;;  %v2608_v42 = vpop.f32.mrf.mxu1 }
 0x491   :  { %v2638_v57 = vadd.f32 %v2595_v24, %v2545_v61  ;;  %v2639_v45 = vadd.f32 %v2608_v42, %v2546_v22 }
 0x492   :  { %v2621_v25 = vpop.f32.mrf.mxu2  ;;  %v2634_v40 = vpop.f32.mrf.mxu3 }
 0x493   :  { %v2642_v37 = vsub.f32 0.0, %v2638_v57  ;;  %v2643_v10 = vsub.f32 0.0, %v2639_v45  ;;  %v2640_v60 = vadd.f32 %v2621_v25, %v2547_v23  ;;  %v2641_v35 = vadd.f32 %v2634_v40, %v2548_v2 }
 0x495   :  { %v2646_v41 = vmul.f32 1.442695, %v2642_v37  ;;  %v2648_v27 = vmul.f32 1.442695, %v2643_v10  ;;  %v2644_v34 = vsub.f32 0.0, %v2640_v60  ;;  %v2645_v29 = vsub.f32 0.0, %v2641_v35 }
 0x497   :  { %2831 = vpow2.f32 %v2646_v41  ;;  %v2650_v31 = vmul.f32 1.442695, %v2644_v34  ;;  %v2652_v56 = vmul.f32 1.442695, %v2645_v29 }
 0x498   :  { %2833 = vpow2.f32 %v2648_v27  ;;  %v2610_v63 = vpop.f32.mrf.mxu1  ;;  %v2597_v17 = vpop.f32.mrf.mxu0 }
 0x499   :  { %2835 = vpow2.f32 %v2650_v31 }
 0x49a   :  { %2837 = vpow2.f32 %v2652_v56  ;;  %v2623_v36 = vpop.f32.mrf.mxu2  ;;  %v2636_v7 = vpop.f32.mrf.mxu3 }
 0x49d   :  { %v2832_v53 = vpop.eup %2831 }
 0x49e   :  { %v2834_v46 = vpop.eup %2833  ;;  %v2654_v9 = vadd.f32 1.0, %v2832_v53 }
 0x49f   :  { %v2836_v1 = vpop.eup %2835  ;;  %v2655_v62 = vadd.f32 1.0, %v2834_v46 }
 0x4a0   :  { %v2838_v32 = vpop.eup %2837  ;;  %2839 = vrcp.f32 %v2654_v9  ;;  %v2656_v8 = vadd.f32 1.0, %v2836_v1 }
 0x4a1   :  { %2841 = vrcp.f32 %v2655_v62  ;;  %v2657_v4 = vadd.f32 1.0, %v2838_v32 }
 0x4a2   :  { %2843 = vrcp.f32 %v2656_v8 }
 0x4a3   :  { %2845 = vrcp.f32 %v2657_v4 }
 0x4a6   :  { %v2840_v11 = vpop.eup %2839 }
 0x4a7   :  { %v2842_v43 = vpop.eup %2841 }
 0x4a8   :  { %v2844_v20 = vpop.eup %2843  ;;  %v2666_v21 = vrot.slane %v2842_v43, 6 }
 0x4a9   :  { %v2846_v6 = vpop.eup %2845  ;;  %v2667_v58 = vrot.slane %v2844_v20, 4 }
 0x4aa   :  { %v2670_v59 = vsel %vm2669_vm10, %v2840_v11, %v2666_v21  ;;  %v2668_v13 = vrot.slane %v2846_v6, 2 }
 0x4ac   :  { %v2672_v18 = vsel %vm2671_vm11, %v2667_v58, %v2668_v13 }
 0x4ad   :  { %v2673_v19 = vsel %vm78_vm3, %v2670_v59, %v2672_v18 }
 0x4ae   :  { %2675 = vst [vmem:[%s3882_s8] sm:$0xff] %v2673_v19 }

</bundles_post_ra>
